<compile_context>
chip_gen: v7x
topology: tpu7x:2x2x1
jax: 0.10.0
libtpu: 0.0.40
codegen_flags: <defaults>
</compile_context>

<pallas_src>
import jax
import jax.numpy as jnp
from jax.experimental import pallas as pl
from jax.experimental.pallas import tpu as pltpu

D_IN = 784
HIDDEN = 1000
HIDDEN_PAD = 1024   # 1000 -> 8 * 128
D_OUT = 10
OUT_PAD = 128       # 10 -> 128 (lane-dense output stores)


def _round_up(x, m):
    return ((x + m - 1) // m) * m


def mlp_kernel(x_ref, w1_ref, b1_ref, w2_ref, b2_ref, o_ref):
    # x: (TM, 784) bf16, w1: (784, 1024) bf16, b1: (1, 1024) f32
    # w2: (1024, 128) bf16, b2: (1, 128) f32, o: (TM, 128) f32
    h = jnp.dot(x_ref[...], w1_ref[...], preferred_element_type=jnp.float32)
    h = jnp.maximum(h + b1_ref[...], 0.0)
    # Cast activations to bf16 for the second MXU matmul; keep f32 accumulation.
    out = jnp.dot(h.astype(jnp.bfloat16), w2_ref[...],
                  preferred_element_type=jnp.float32)
    o_ref[...] = out + b2_ref[...]


def net_forward(x, w1, b1, w2, b2, tile_m=512):
    """Forward of Net. x: (N, 784) float; params padded/bf16 (see init_params)."""
    n = x.shape[0]
    # Batch tile: multiple of 8 (sublane), capped at tile_m; pad batch to a
    # whole number of tiles so every grid step sees a full block.
    tm = min(tile_m, _round_up(n, 8))
    n_pad = _round_up(n, tm)
    x_p = x.astype(jnp.bfloat16)
    if n_pad != n:
        x_p = jnp.pad(x_p, ((0, n_pad - n), (0, 0)))

    bytes_accessed = (
        x_p.size * 2 + w1.size * 2 + b1.size * 4 + w2.size * 2 + b2.size * 4
        + n_pad * OUT_PAD * 4
    )
    flops = 2 * n_pad * (D_IN * HIDDEN_PAD + HIDDEN_PAD * OUT_PAD)

    out = pl.pallas_call(
        mlp_kernel,
        out_shape=jax.ShapeDtypeStruct((n_pad, OUT_PAD), jnp.float32),
        grid=(n_pad // tm,),
        in_specs=[
            pl.BlockSpec((tm, D_IN), lambda i: (i, 0)),   # x: tiled over batch
            pl.BlockSpec(w1.shape, lambda i: (0, 0)),     # weights: VMEM-resident
            pl.BlockSpec(b1.shape, lambda i: (0, 0)),
            pl.BlockSpec(w2.shape, lambda i: (0, 0)),
            pl.BlockSpec(b2.shape, lambda i: (0, 0)),
        ],
        out_specs=pl.BlockSpec((tm, OUT_PAD), lambda i: (i, 0)),
        compiler_params=pltpu.CompilerParams(
            dimension_semantics=("parallel",),
            vmem_limit_bytes=32 << 20,
        ),
        cost_estimate=pl.CostEstimate(
            flops=flops, transcendentals=0, bytes_accessed=bytes_accessed),
    )(x_p, w1, b1, w2, b2)

    # Strip batch padding and the lane padding on the output dim.
    return out[:n, :D_OUT]


def init_params(key):
    """PyTorch nn.Linear default init (U(-1/sqrt(fan_in), +)), padded + bf16.

    Padding is with zeros, so padded hidden units contribute exactly 0
    (ReLU(0 + 0) = 0 and the corresponding w2 rows are 0) and the padded output
    lanes are sliced off in the wrapper -> semantics identical to the module.
    """
    k1, k2, k3, k4 = jax.random.split(key, 4)
    bound1 = 1.0 / jnp.sqrt(float(D_IN))
    bound2 = 1.0 / jnp.sqrt(float(HIDDEN))
    w1 = jax.random.uniform(k1, (D_IN, HIDDEN), jnp.float32, -bound1, bound1)
    b1 = jax.random.uniform(k2, (1, HIDDEN), jnp.float32, -bound1, bound1)
    w2 = jax.random.uniform(k3, (HIDDEN, D_OUT), jnp.float32, -bound2, bound2)
    b2 = jax.random.uniform(k4, (1, D_OUT), jnp.float32, -bound2, bound2)

    # Pad hidden 1000->1024 and output 10->128 with zeros; weights to bf16,
    # biases stay f32 (added to the f32 accumulator inside the kernel).
    w1_p = jnp.zeros((D_IN, HIDDEN_PAD), jnp.bfloat16).at[:, :HIDDEN].set(
        w1.astype(jnp.bfloat16))
    b1_p = jnp.zeros((1, HIDDEN_PAD), jnp.float32).at[:, :HIDDEN].set(b1)
    w2_p = jnp.zeros((HIDDEN_PAD, OUT_PAD), jnp.bfloat16).at[:HIDDEN, :D_OUT].set(
        w2.astype(jnp.bfloat16))
    b2_p = jnp.zeros((1, OUT_PAD), jnp.float32).at[:, :D_OUT].set(b2)
    return w1_p, b1_p, w2_p, b2_p


if __name__ == "__main__":
    key = jax.random.PRNGKey(0)
    k_x, k_p = jax.random.split(key)
    batch = 8
    x = jax.random.normal(k_x, (batch, D_IN), jnp.float32)
    w1, b1, w2, b2 = init_params(k_p)

    out = net_forward(x, w1, b1, w2, b2)
    out = jax.block_until_ready(out)
    assert out.shape == (batch, D_OUT)

    # Reference in plain JAX using the same (bf16-rounded) parameter values.
    x32 = x.astype(jnp.bfloat16).astype(jnp.float32)
    w1_32 = w1[:, :HIDDEN].astype(jnp.float32)
    b1_32 = b1[:, :HIDDEN]
    w2_32 = w2[:HIDDEN, :D_OUT].astype(jnp.float32)
    b2_32 = b2[:, :D_OUT]
    ref = jnp.maximum(x32 @ w1_32 + b1_32, 0.0) @ w2_32 + b2_32
    assert jnp.allclose(out, ref, atol=2e-2, rtol=2e-2), (
        float(jnp.max(jnp.abs(out - ref))))

    print("KERNEL_OK")
</pallas_src>

<mosaic_0001>
module attributes {stable_mosaic.version = 11 : i64} {
  func.func @mlp_kernel(%arg0: i32, %arg1: memref<8x784xbf16, #tpu.memory_space<vmem>>, %arg2: memref<784x1024xbf16, #tpu.memory_space<vmem>>, %arg3: memref<1x1024xf32, #tpu.memory_space<vmem>>, %arg4: memref<1024x128xbf16, #tpu.memory_space<vmem>>, %arg5: memref<1x128xf32, #tpu.memory_space<vmem>>, %arg6: memref<8x128xf32, #tpu.memory_space<vmem>>) attributes {dimension_semantics = [#tpu.dimension_semantics<parallel>], iteration_bounds = array<i64: 1>, scalar_prefetch = 0 : i64, scratch_operands = 0 : i64, tpu.core_type = #tpu.core_type<tc>, window_params = [{transform_indices = @transform_0, window_bounds = array<i64: 8, 784>}, {pipeline_mode = #tpu.pipeline_mode<synchronous>, transform_indices = @transform_1, window_bounds = array<i64: 784, 1024>}, {pipeline_mode = #tpu.pipeline_mode<synchronous>, transform_indices = @transform_2, window_bounds = array<i64: 1, 1024>}, {pipeline_mode = #tpu.pipeline_mode<synchronous>, transform_indices = @transform_3, window_bounds = array<i64: 1024, 128>}, {pipeline_mode = #tpu.pipeline_mode<synchronous>, transform_indices = @transform_4, window_bounds = array<i64: 1, 128>}, {transform_indices = @transform_5, window_bounds = array<i64: 8, 128>}]} {
    %c0 = arith.constant 0 : index
    %c0_0 = arith.constant 0 : index
    %0 = vector.load %arg1[%c0, %c0_0] : memref<8x784xbf16, #tpu.memory_space<vmem>>, vector<8x784xbf16>
    %c0_1 = arith.constant 0 : index
    %c0_2 = arith.constant 0 : index
    %1 = vector.load %arg2[%c0_1, %c0_2] : memref<784x1024xbf16, #tpu.memory_space<vmem>>, vector<784x1024xbf16>
    %cst = arith.constant dense<0.000000e+00> : vector<8x1024xf32>
    %2 = tpu.matmul %0, %1, %cst {dimension_numbers = #tpu.dot_dimension_numbers<[1], [0], [0], [1], [0, 0, 1, 1], [], []>} : vector<8x784xbf16>, vector<784x1024xbf16>, vector<8x1024xf32> -> vector<8x1024xf32>
    %c0_3 = arith.constant 0 : index
    %c0_4 = arith.constant 0 : index
    %3 = vector.load %arg3[%c0_3, %c0_4] : memref<1x1024xf32, #tpu.memory_space<vmem>>, vector<1x1024xf32>
    %4 = vector.broadcast %3 : vector<1x1024xf32> to vector<8x1024xf32>
    %5 = arith.addf %2, %4 : vector<8x1024xf32>
    %cst_5 = arith.constant 0.000000e+00 : f32
    %6 = vector.broadcast %cst_5 : f32 to vector<8x1024xf32>
    %7 = arith.maximumf %5, %6 : vector<8x1024xf32>
    %8 = arith.truncf %7 : vector<8x1024xf32> to vector<8x1024xbf16>
    %c0_6 = arith.constant 0 : index
    %c0_7 = arith.constant 0 : index
    %9 = vector.load %arg4[%c0_6, %c0_7] : memref<1024x128xbf16, #tpu.memory_space<vmem>>, vector<1024x128xbf16>
    %cst_8 = arith.constant dense<0.000000e+00> : vector<8x128xf32>
    %10 = tpu.matmul %8, %9, %cst_8 {dimension_numbers = #tpu.dot_dimension_numbers<[1], [0], [0], [1], [0, 0, 1, 1], [], []>} : vector<8x1024xbf16>, vector<1024x128xbf16>, vector<8x128xf32> -> vector<8x128xf32>
    %c0_9 = arith.constant 0 : index
    %c0_10 = arith.constant 0 : index
    %11 = vector.load %arg5[%c0_9, %c0_10] : memref<1x128xf32, #tpu.memory_space<vmem>>, vector<1x128xf32>
    %12 = vector.broadcast %11 : vector<1x128xf32> to vector<8x128xf32>
    %13 = arith.addf %10, %12 : vector<8x128xf32>
    %c0_11 = arith.constant 0 : index
    %c0_12 = arith.constant 0 : index
    %14 = vector.load %arg6[%c0_11, %c0_12] : memref<8x128xf32, #tpu.memory_space<vmem>>, vector<8x128xf32>
    tpu.vector_store %arg6[%c0_11, %c0_12], %13 {strides = array<i32>} : memref<8x128xf32, #tpu.memory_space<vmem>>, vector<8x128xf32>,
    return
  }
  func.func @transform_0(%arg0: i32) -> (i32, i32) {
    %c0_i32 = arith.constant 0 : i32
    %c0_i32_0 = arith.constant 0 : i32
    return %arg0, %c0_i32 : i32, i32
  }
  func.func @transform_1(%arg0: i32) -> (i32, i32) {
    %c0_i32 = arith.constant 0 : i32
    %c0_i32_0 = arith.constant 0 : i32
    %c0_i32_1 = arith.constant 0 : i32
    return %c0_i32, %c0_i32_0 : i32, i32
  }
  func.func @transform_2(%arg0: i32) -> (i32, i32) {
    %c0_i32 = arith.constant 0 : i32
    %c0_i32_0 = arith.constant 0 : i32
    %c0_i32_1 = arith.constant 0 : i32
    return %c0_i32, %c0_i32_0 : i32, i32
  }
  func.func @transform_3(%arg0: i32) -> (i32, i32) {
    %c0_i32 = arith.constant 0 : i32
    %c0_i32_0 = arith.constant 0 : i32
    %c0_i32_1 = arith.constant 0 : i32
    return %c0_i32, %c0_i32_0 : i32, i32
  }
  func.func @transform_4(%arg0: i32) -> (i32, i32) {
    %c0_i32 = arith.constant 0 : i32
    %c0_i32_0 = arith.constant 0 : i32
    %c0_i32_1 = arith.constant 0 : i32
    return %c0_i32, %c0_i32_0 : i32, i32
  }
  func.func @transform_5(%arg0: i32) -> (i32, i32) {
    %c0_i32 = arith.constant 0 : i32
    %c0_i32_0 = arith.constant 0 : i32
    return %arg0, %c0_i32 : i32, i32
  }
}

</mosaic_0001>

<bundles_post_ra>
// kernel: tpu_custom_call.1
= control target key start
LH: loop header
LB: loop body
LE: loop exit
PB: predicated region body
PF: predicated region fallthrough
CT: control target
= control target key end

     0   :  { %10 = vsyncpa [#allocation3], 0  ;;  %s4909_s0 = inlined_call_operand.hbm [shape: bf16[8,784], index: 0, kind: input, shape index: {}]   ;;  %s4910_s1 = inlined_call_operand.hbm [shape: bf16[784,1024], index: 1, kind: input, shape index: {}]   ;;  %s4911_s2 = inlined_call_operand.hbm [shape: f32[1,1024], index: 2, kind: input, shape index: {}]   ;;  %s4912_s3 = inlined_call_operand.hbm [shape: bf16[1024,128], index: 3, kind: input, shape index: {}]   ;;  %s4913_s4 = inlined_call_operand.hbm [shape: f32[1,128], index: 4, kind: input, shape index: {}]   ;;  %s4914_s5 = inlined_call_operand.hbm [shape: f32[8,128], index: 5, kind: output, shape index: {}]  }
   0x1   :  { %11 = vsyncpa [#allocation6], 0 }
   0x2   :  { %12 = vsyncpa [#allocation9], 0 }
   0x3   :  { %13 = vsyncpa [#allocation4], 0  ;;  %s4714_s18 = smov [#allocation5]   ;;  %s4574_s22 = scalar_lea.hbm %s4910_s1, 50176 }
   0x4   :  { %s29_s19 = sshll.u32 %s4714_s18, 4  ;;  %p4575_p0 = scmp.ne.s32.totalorder %s4910_s1, %s4574_s22  ;;  %s30_s19 = int_to_ptr.vmem [resolvable:$true] %s29_s19 }
   0x5   :  { %p4578_p1 = scmp.lt.u32.totalorder %s4574_s22, %s4910_s1 }
   0x7   :  { %p4580_p2 = pnand %p4578_p1, %p4575_p0 }
   0x9   :  { %4583 = shalt.err (!%p4580_p2)
}
   0xa   :  { %s4584_s27 = scalar_lea.vmem %s30_s19, 50176  ;;  %p4589_p4 = scmp.lt.s32.totalorder %s30_s19, %s30_s19 }
   0xb   :  { %p4585_p3 = scmp.ne.s32.totalorder %s30_s19, %s4584_s27  ;;  %p4590_p5 = scmp.lt.s32.totalorder %s4584_s27, %s4584_s27 }
   0xd   :  { %p4591_p6 = por %p4590_p5, %p4589_p4 }
   0xf   :  { %p4592_p7 = pnand %p4591_p6, %p4585_p3 }
  0x11   :  { %4595 = shalt.err (!%p4592_p7)
}
  0x12   :  { %s4715_s28 = smov 512   ;;  %s4716_s29 = smov 32  }
  0x13   :  { %35 = dma.hbm_to_vmem [thread:$0]  %s4910_s1, 50176, %s30_s19, [#allocation6], %s4715_s28, %s4715_s28, %s4716_s29  }
  0x14   :  { %s4717_s7 = smov [#allocation8]   ;;  %s4596_s11 = scalar_lea.hbm %s4912_s3, 8192 }
  0x15   :  { %s51_s8 = sshll.u32 %s4717_s7, 4  ;;  %p4597_p8 = scmp.ne.s32.totalorder %s4912_s3, %s4596_s11  ;;  %s52_s8 = int_to_ptr.vmem [resolvable:$true] %s51_s8 }
  0x16   :  { %p4600_p9 = scmp.lt.u32.totalorder %s4596_s11, %s4912_s3 }
  0x18   :  { %p4602_p10 = pnand %p4600_p9, %p4597_p8 }
  0x1a   :  { %4605 = shalt.err (!%p4602_p10)
}
  0x1b   :  { %s4606_s16 = scalar_lea.vmem %s52_s8, 8192  ;;  %p4611_p12 = scmp.lt.s32.totalorder %s52_s8, %s52_s8 }
  0x1c   :  { %p4607_p11 = scmp.ne.s32.totalorder %s52_s8, %s4606_s16  ;;  %p4612_p13 = scmp.lt.s32.totalorder %s4606_s16, %s4606_s16 }
  0x1e   :  { %p4613_p0 = por %p4612_p13, %p4611_p12 }
  0x20   :  { %p4614_p1 = pnand %p4613_p0, %p4607_p11 }
  0x22   :  { %4617 = shalt.err (!%p4614_p1)
}
  0x23   :  { %s4718_s1 = smov 64   ;;  %s4719_s17 = smov 4  }
  0x24   :  { %57 = dma.hbm_to_vmem [thread:$0]  %s4912_s3, 8192, %s52_s8, [#allocation9], %s4718_s1, %s4718_s1, %s4719_s17  }
  0x25   :  { %s4720_s20 = smov [#allocation2]   ;;  %s4721_s22 = smov [#allocation7]  }
  0x26   :  { %s20_s21 = sshll.u32 %s4720_s20, 4  ;;  %s42_s23 = sshll.u32 %s4721_s22, 4  ;;  %s21_s21 = int_to_ptr.vmem [resolvable:$true] %s20_s21  ;;  %s43_s23 = int_to_ptr.vmem [resolvable:$true] %s42_s23 }
  0x27   :  { %s4618_s26 = scalar_lea.hbm %s4909_s0, 448 }
  0x28   :  { %p4619_p2 = scmp.ne.s32.totalorder %s4909_s0, %s4618_s26  ;;  %p4622_p3 = scmp.lt.u32.totalorder %s4618_s26, %s4909_s0 }
  0x2a   :  { %p4624_p4 = pnand %p4622_p3, %p4619_p2 }
  0x2c   :  { %4627 = shalt.err (!%p4624_p4)
}
  0x2d   :  { %s4628_s3 = scalar_lea.vmem %s21_s21, 448  ;;  %p4633_p6 = scmp.lt.s32.totalorder %s21_s21, %s21_s21 }
  0x2e   :  { %p4629_p5 = scmp.ne.s32.totalorder %s21_s21, %s4628_s3  ;;  %p4634_p7 = scmp.lt.s32.totalorder %s4628_s3, %s4628_s3 }
  0x30   :  { %p4635_p8 = por %p4634_p7, %p4633_p6 }
  0x32   :  { %p4636_p9 = pnand %p4635_p8, %p4629_p5 }
  0x34   :  { %4639 = shalt.err (!%p4636_p9)
}
  0x35   :  { %23 = dma.hbm_to_vmem [thread:$0]  %s4909_s0, 448, %s21_s21, [#allocation3]  }
  0x36   :  { %s4640_s10 = scalar_lea.hbm %s4911_s2, 128 }
  0x37   :  { %p4641_p10 = scmp.ne.s32.totalorder %s4911_s2, %s4640_s10  ;;  %p4644_p11 = scmp.lt.u32.totalorder %s4640_s10, %s4911_s2 }
  0x39   :  { %p4646_p12 = pnand %p4644_p11, %p4641_p10 }
  0x3b   :  { %4649 = shalt.err (!%p4646_p12)
}
  0x3c   :  { %s4650_s15 = scalar_lea.vmem %s43_s23, 128  ;;  %p4655_p0 = scmp.lt.s32.totalorder %s43_s23, %s43_s23 }
  0x3d   :  { %p4651_p13 = scmp.ne.s32.totalorder %s43_s23, %s4650_s15  ;;  %p4656_p1 = scmp.lt.s32.totalorder %s4650_s15, %s4650_s15 }
  0x3f   :  { %p4657_p2 = por %p4656_p1, %p4655_p0 }
  0x41   :  { %p4658_p3 = pnand %p4657_p2, %p4651_p13 }
  0x43   :  { %4661 = shalt.err (!%p4658_p3)
}
  0x44   :  { %45 = dma.hbm_to_vmem [thread:$0]  %s4911_s2, 128, %s43_s23, [#allocation6]  }
  0x45   :  { %s4722_s1 = smov [#allocation10]   ;;  %s4662_s20 = scalar_lea.hbm %s4913_s4, 16 }
  0x46   :  { %s64_s17 = sshll.u32 %s4722_s1, 4  ;;  %p4663_p4 = scmp.ne.s32.totalorder %s4913_s4, %s4662_s20  ;;  %s65_s17 = int_to_ptr.vmem [resolvable:$true] %s64_s17 }
  0x47   :  { %p4666_p5 = scmp.lt.u32.totalorder %s4662_s20, %s4913_s4 }
  0x49   :  { %p4668_p6 = pnand %p4666_p5, %p4663_p4 }
  0x4b   :  { %4671 = shalt.err (!%p4668_p6)
}
  0x4c   :  { %s4672_s26 = scalar_lea.vmem %s65_s17, 16  ;;  %s4676_s2 = scalar_lea.vmem %s65_s17, 32 }
  0x4d   :  { %p4673_p7 = scmp.ne.s32.totalorder %s65_s17, %s4672_s26  ;;  %p4677_p8 = scmp.lt.s32.totalorder %s65_s17, %s65_s17 }
  0x4e   :  { %p4678_p9 = scmp.lt.s32.totalorder %s4676_s2, %s4672_s26 }
  0x50   :  { %p4679_p10 = por %p4678_p9, %p4677_p8 }
  0x52   :  { %p4680_p11 = pnand %p4679_p10, %p4673_p7 }
  0x54   :  { %4683 = shalt.err (!%p4680_p11)
}
  0x55   :  { %67 = dma.hbm_to_vmem [thread:$0]  %s4913_s4, 16, %s65_s17, [#allocation9]  }
  0x56   :  { %4706 = dma.done.wait [#allocation3], 448  }
  0x57   :  { %4707 = vsyncadd [#allocation3], 4294966848 }
  0x58   :  { %4708 = dma.done.wait [#allocation6], 50304  }
  0x59   :  { %4709 = vsyncadd [#allocation6], 4294916992 }
  0x5a   :  { %4710 = dma.done.wait [#allocation9], 8208  }
  0x5b   :  { %4711 = vsyncadd [#allocation9], 4294959088  ;;  %v88_v0 = vld [vmem:[#allocation5] sm:$0xff]  ;;  %v89_v2 = vld [vmem:[#allocation5 + $0x8] sm:$0xff]  ;;  %vm2506_vm0 = vcmask 130048   ;;  %s4724_s4 = smov [#allocation11]  }
  0x5c   :  { %v92_v1 = vld [vmem:[#allocation5 + $0x20] sm:$0xff]  ;;  %v93_v4 = vld [vmem:[#allocation5 + $0x28] sm:$0xff]  ;;  %s3868_s28 = sshll.u32 %s4724_s4, 4  ;;  %s3869_s28 = int_to_ptr.vmem [resolvable:$true] %s3868_s28 }
  0x5d   :  { %v3887_v3 = vcombine.high %v88_v0, %v92_v1  ;;  %v3886_v5 = vcombine.low %v88_v0, %v92_v1  ;;  %v96_v6 = vld [vmem:[#allocation5 + $0x40] sm:$0xff]  ;;  %v3889_v8 = vcombine.high %v89_v2, %v93_v4  ;;  %v3888_v9 = vcombine.low %v89_v2, %v93_v4  ;;  %v97_v11 = vld [vmem:[#allocation5 + $0x48] sm:$0xff]  ;;  %s4684_s29 = scalar_lea.vmem %s3869_s28, 128  ;;  %p4689_p13 = scmp.lt.s32.totalorder %s3869_s28, %s3869_s28 }
  0x5e   :  { %v100_v7 = vld [vmem:[#allocation5 + $0x60] sm:$0xff]  ;;  %v101_v12 = vld [vmem:[#allocation5 + $0x68] sm:$0xff]  ;;  %p4685_p12 = scmp.ne.s32.totalorder %s3869_s28, %s4684_s29  ;;  %p4690_p0 = scmp.lt.s32.totalorder %s4684_s29, %s4684_s29 }
  0x5f   :  { %v3895_v10 = vcombine.high %v96_v6, %v100_v7  ;;  %v104_v13 = vld [vmem:[#allocation5 + $0x80] sm:$0xff]  ;;  %2510 = vmatprep.subr.bf16.mxu0 %v3887_v3  ;;  %v3897_v14 = vcombine.high %v97_v11, %v101_v12  ;;  %v105_v16 = vld [vmem:[#allocation5 + $0x88] sm:$0xff]  ;;  %2674 = vmatprep.subr.bf16.mxu1 %v3889_v8  ;;  %v3894_v18 = vcombine.low %v96_v6, %v100_v7 }
  0x60   :  { %v108_v15 = vld [vmem:[#allocation5 + $0xa0] sm:$0xff]  ;;  %v109_v17 = vld [vmem:[#allocation5 + $0xa8] sm:$0xff]  ;;  %2511 = vmatpush1.bf16.msra.mxu0 %v3886_v5  ;;  %2675 = vmatpush1.bf16.msra.mxu1 %v3888_v9  ;;  %v3896_v19 = vcombine.low %v97_v11, %v101_v12  ;;  %p4691_p1 = por %p4690_p0, %p4689_p13 }
  0x61   :  { %2512 = vmatprep.subr.bf16.mxu0 %v3895_v10  ;;  %v3903_v20 = vcombine.high %v104_v13, %v108_v15  ;;  %2676 = vmatprep.subr.bf16.mxu1 %v3897_v14  ;;  %v3905_v21 = vcombine.high %v105_v16, %v109_v17  ;;  %v112_v22 = vld [vmem:[#allocation5 + $0xc0] sm:$0xff]  ;;  %v113_v24 = vld [vmem:[#allocation5 + $0xc8] sm:$0xff]  ;;  %v3902_v26 = vcombine.low %v104_v13, %v108_v15 }
  0x62   :  { %v116_v23 = vld [vmem:[#allocation5 + $0xe0] sm:$0xff]  ;;  %v117_v25 = vld [vmem:[#allocation5 + $0xe8] sm:$0xff]  ;;  %v3904_v27 = vcombine.low %v105_v16, %v109_v17  ;;  %p4692_p2 = pnand %p4691_p1, %p4685_p12 }
  0x63   :  { %v3911_v28 = vcombine.high %v112_v22, %v116_v23  ;;  %v3913_v29 = vcombine.high %v113_v24, %v117_v25  ;;  %v120_v30 = vld [vmem:[#allocation5 + $0x100] sm:$0xff]  ;;  %v121_v32 = vld [vmem:[#allocation5 + $0x108] sm:$0xff]  ;;  %v3910_v34 = vcombine.low %v112_v22, %v116_v23  ;;  %v3912_v35 = vcombine.low %v113_v24, %v117_v25 }
  0x64   :  { %2513 = vmatpush1.bf16.msra.mxu0 %v3894_v18  ;;  %2677 = vmatpush1.bf16.msra.mxu1 %v3896_v19  ;;  %v124_v31 = vld [vmem:[#allocation5 + $0x120] sm:$0xff]  ;;  %v125_v33 = vld [vmem:[#allocation5 + $0x128] sm:$0xff] }
  0x65   :  { %2514 = vmatprep.subr.bf16.mxu0 %v3903_v20  ;;  %2678 = vmatprep.subr.bf16.mxu1 %v3905_v21  ;;  %v3919_v36 = vcombine.high %v120_v30, %v124_v31  ;;  %v3921_v37 = vcombine.high %v121_v32, %v125_v33  ;;  %v128_v38 = vld [vmem:[#allocation5 + $0x140] sm:$0xff]  ;;  %v129_v40 = vld [vmem:[#allocation5 + $0x148] sm:$0xff]  ;;  %v3918_v42 = vcombine.low %v120_v30, %v124_v31 }
  0x66   :  { %v132_v39 = vld [vmem:[#allocation5 + $0x160] sm:$0xff]  ;;  %v133_v41 = vld [vmem:[#allocation5 + $0x168] sm:$0xff]  ;;  %v3920_v43 = vcombine.low %v121_v32, %v125_v33 }
  0x67   :  { %v3927_v44 = vcombine.high %v128_v38, %v132_v39  ;;  %v3929_v45 = vcombine.high %v129_v40, %v133_v41  ;;  %v136_v46 = vld [vmem:[#allocation5 + $0x180] sm:$0xff]  ;;  %v137_v48 = vld [vmem:[#allocation5 + $0x188] sm:$0xff]  ;;  %v3926_v50 = vcombine.low %v128_v38, %v132_v39  ;;  %v3928_v51 = vcombine.low %v129_v40, %v133_v41 }
  0x68   :  { %2515 = vmatpush1.bf16.msra.mxu0 %v3902_v26  ;;  %2679 = vmatpush1.bf16.msra.mxu1 %v3904_v27  ;;  %v140_v47 = vld [vmem:[#allocation5 + $0x1a0] sm:$0xff]  ;;  %v141_v49 = vld [vmem:[#allocation5 + $0x1a8] sm:$0xff] }
  0x69   :  { %2516 = vmatprep.subr.bf16.mxu0 %v3911_v28  ;;  %2680 = vmatprep.subr.bf16.mxu1 %v3913_v29  ;;  %v3935_v52 = vcombine.high %v136_v46, %v140_v47  ;;  %v4815_v53 = vld [vmem:[#allocation2] sm:$0xff]  ;;  %v3937_v54 = vcombine.high %v137_v48, %v141_v49  ;;  %v3934_v60 = vcombine.low %v136_v46, %v140_v47 }
  0x6a   :  { %v144_v55 = vld [vmem:[#allocation5 + $0x1c0] sm:$0xff]  ;;  %v4819_v57 = vcombine.high %v4815_v53, %v4815_v53  ;;  %v145_v58 = vld [vmem:[#allocation5 + $0x1c8] sm:$0xff]  ;;  %v3936_v61 = vcombine.low %v137_v48, %v141_v49 }
  0x6b   :  { %v148_v56 = vld [vmem:[#allocation5 + $0x1e0] sm:$0xff]  ;;  %v149_v59 = vld [vmem:[#allocation5 + $0x1e8] sm:$0xff] }
  0x6c   :  { %2517 = vmatpush1.bf16.msra.mxu0 %v3910_v34  ;;  %2681 = vmatpush1.bf16.msra.mxu1 %v3912_v35  ;;  %v3943_v62 = vcombine.high %v144_v55, %v148_v56  ;;  %v3945_v63 = vcombine.high %v145_v58, %v149_v59  ;;  %v152_v0 = vld [vmem:[#allocation5 + $0x200] sm:$0xff]  ;;  %v153_v2 = vld [vmem:[#allocation5 + $0x208] sm:$0xff]  ;;  %v3942_v4 = vcombine.low %v144_v55, %v148_v56 }
  0x6d   :  { %2518 = vmatprep.subr.bf16.mxu0 %v3919_v36  ;;  %2682 = vmatprep.subr.bf16.mxu1 %v3921_v37  ;;  %v156_v1 = vld [vmem:[#allocation5 + $0x220] sm:$0xff]  ;;  %v157_v3 = vld [vmem:[#allocation5 + $0x228] sm:$0xff]  ;;  %v3944_v5 = vcombine.low %v145_v58, %v149_v59 }
  0x6e   :  { %2542 = vmatprep.mubr.bf16.mxu0 %v4819_v57  ;;  %2706 = vmatprep.mubr.bf16.mxu1 %v4819_v57  ;;  %v3951_v6 = vcombine.high %v152_v0, %v156_v1  ;;  %v3953_v7 = vcombine.high %v153_v2, %v157_v3  ;;  %v160_v8 = vld [vmem:[#allocation5 + $0x240] sm:$0xff]  ;;  %v161_v10 = vld [vmem:[#allocation5 + $0x248] sm:$0xff]  ;;  %v3950_v12 = vcombine.low %v152_v0, %v156_v1 }
  0x6f   :  { %v164_v9 = vld [vmem:[#allocation5 + $0x260] sm:$0xff]  ;;  %v165_v11 = vld [vmem:[#allocation5 + $0x268] sm:$0xff]  ;;  %v3952_v13 = vcombine.low %v153_v2, %v157_v3 }
  0x70   :  { %2519 = vmatpush1.bf16.msra.mxu0 %v3918_v42  ;;  %2683 = vmatpush1.bf16.msra.mxu1 %v3920_v43  ;;  %v3959_v14 = vcombine.high %v160_v8, %v164_v9  ;;  %v3961_v15 = vcombine.high %v161_v10, %v165_v11  ;;  %v168_v16 = vld [vmem:[#allocation5 + $0x280] sm:$0xff]  ;;  %v169_v18 = vld [vmem:[#allocation5 + $0x288] sm:$0xff]  ;;  %v3958_v20 = vcombine.low %v160_v8, %v164_v9 }
  0x71   :  { %2520 = vmatprep.subr.bf16.mxu0 %v3927_v44  ;;  %2684 = vmatprep.subr.bf16.mxu1 %v3929_v45  ;;  %v172_v17 = vld [vmem:[#allocation5 + $0x2a0] sm:$0xff]  ;;  %v173_v19 = vld [vmem:[#allocation5 + $0x2a8] sm:$0xff]  ;;  %v3960_v21 = vcombine.low %v161_v10, %v165_v11 }
  0x72   :  { %v3967_v22 = vcombine.high %v168_v16, %v172_v17  ;;  %v3969_v23 = vcombine.high %v169_v18, %v173_v19  ;;  %v176_v24 = vld [vmem:[#allocation5 + $0x2c0] sm:$0xff]  ;;  %v177_v26 = vld [vmem:[#allocation5 + $0x2c8] sm:$0xff]  ;;  %v3966_v28 = vcombine.low %v168_v16, %v172_v17  ;;  %v3968_v29 = vcombine.low %v169_v18, %v173_v19 }
  0x73   :  { %v180_v25 = vld [vmem:[#allocation5 + $0x2e0] sm:$0xff]  ;;  %v181_v27 = vld [vmem:[#allocation5 + $0x2e8] sm:$0xff] }
  0x74   :  { %2521 = vmatpush1.bf16.msra.mxu0 %v3926_v50  ;;  %2685 = vmatpush1.bf16.msra.mxu1 %v3928_v51  ;;  %v3975_v30 = vcombine.high %v176_v24, %v180_v25  ;;  %v3977_v31 = vcombine.high %v177_v26, %v181_v27  ;;  %v184_v32 = vld [vmem:[#allocation5 + $0x300] sm:$0xff]  ;;  %v185_v34 = vld [vmem:[#allocation5 + $0x308] sm:$0xff]  ;;  %v3974_v36 = vcombine.low %v176_v24, %v180_v25 }
  0x75   :  { %2522 = vmatprep.subr.bf16.mxu0 %v3935_v52  ;;  %2686 = vmatprep.subr.bf16.mxu1 %v3937_v54  ;;  %v188_v33 = vld [vmem:[#allocation5 + $0x320] sm:$0xff]  ;;  %v189_v35 = vld [vmem:[#allocation5 + $0x328] sm:$0xff]  ;;  %v3976_v37 = vcombine.low %v177_v26, %v181_v27 }
  0x76   :  { %v3983_v38 = vcombine.high %v184_v32, %v188_v33  ;;  %v3985_v39 = vcombine.high %v185_v34, %v189_v35  ;;  %v192_v40 = vld [vmem:[#allocation5 + $0x340] sm:$0xff]  ;;  %v193_v42 = vld [vmem:[#allocation5 + $0x348] sm:$0xff]  ;;  %v3982_v44 = vcombine.low %v184_v32, %v188_v33  ;;  %v3984_v45 = vcombine.low %v185_v34, %v189_v35 }
  0x77   :  { %v196_v41 = vld [vmem:[#allocation5 + $0x360] sm:$0xff]  ;;  %v197_v43 = vld [vmem:[#allocation5 + $0x368] sm:$0xff] }
  0x78   :  { %2523 = vmatpush1.bf16.msra.mxu0 %v3934_v60  ;;  %2687 = vmatpush1.bf16.msra.mxu1 %v3936_v61  ;;  %v3991_v46 = vcombine.high %v192_v40, %v196_v41  ;;  %v3993_v47 = vcombine.high %v193_v42, %v197_v43  ;;  %v200_v48 = vld [vmem:[#allocation5 + $0x380] sm:$0xff]  ;;  %v201_v50 = vld [vmem:[#allocation5 + $0x388] sm:$0xff]  ;;  %v3990_v52 = vcombine.low %v192_v40, %v196_v41 }
  0x79   :  { %2524 = vmatprep.subr.bf16.mxu0 %v3943_v62  ;;  %2688 = vmatprep.subr.bf16.mxu1 %v3945_v63  ;;  %v204_v49 = vld [vmem:[#allocation5 + $0x3a0] sm:$0xff]  ;;  %v205_v51 = vld [vmem:[#allocation5 + $0x3a8] sm:$0xff]  ;;  %v3992_v54 = vcombine.low %v193_v42, %v197_v43 }
  0x7a   :  { %v3999_v55 = vcombine.high %v200_v48, %v204_v49  ;;  %v4001_v56 = vcombine.high %v201_v50, %v205_v51  ;;  %v208_v58 = vld [vmem:[#allocation5 + $0x3c0] sm:$0xff]  ;;  %v209_v60 = vld [vmem:[#allocation5 + $0x3c8] sm:$0xff]  ;;  %v3998_v62 = vcombine.low %v200_v48, %v204_v49  ;;  %v4000_v63 = vcombine.low %v201_v50, %v205_v51 }
  0x7b   :  { %v212_v59 = vld [vmem:[#allocation5 + $0x3e0] sm:$0xff]  ;;  %v213_v61 = vld [vmem:[#allocation5 + $0x3e8] sm:$0xff] }
  0x7c   :  { %2525 = vmatpush1.bf16.msra.mxu0 %v3942_v4  ;;  %2689 = vmatpush1.bf16.msra.mxu1 %v3944_v5  ;;  %v4007_v0 = vcombine.high %v208_v58, %v212_v59  ;;  %v4009_v1 = vcombine.high %v209_v60, %v213_v61  ;;  %v216_v2 = vld [vmem:[#allocation5 + $0x400] sm:$0xff]  ;;  %v217_v4 = vld [vmem:[#allocation5 + $0x408] sm:$0xff] }
  0x7d   :  { %2526 = vmatprep.subr.bf16.mxu0 %v3951_v6  ;;  %2690 = vmatprep.subr.bf16.mxu1 %v3953_v7  ;;  %v220_v3 = vld [vmem:[#allocation5 + $0x420] sm:$0xff]  ;;  %v221_v5 = vld [vmem:[#allocation5 + $0x428] sm:$0xff]  ;;  %v4006_v6 = vcombine.low %v208_v58, %v212_v59  ;;  %v4008_v7 = vcombine.low %v209_v60, %v213_v61 }
  0x7e   :  { %v4015_v8 = vcombine.high %v216_v2, %v220_v3  ;;  %v4017_v9 = vcombine.high %v217_v4, %v221_v5  ;;  %v224_v10 = vld [vmem:[#allocation5 + $0x440] sm:$0xff]  ;;  %v4014_v16 = vcombine.low %v216_v2, %v220_v3  ;;  %v4016_v19 = vcombine.low %v217_v4, %v221_v5 }
  0x7f   :  { %v228_v11 = vld [vmem:[#allocation5 + $0x460] sm:$0xff] }
  0x80   :  { %2527 = vmatpush1.bf16.msra.mxu0 %v3950_v12  ;;  %2691 = vmatpush1.bf16.msra.mxu1 %v3952_v13  ;;  %v4825_v12 = vcombine.low %v4815_v53, %v4815_v53  ;;  %v225_v13 = vld [vmem:[#allocation5 + $0x448] sm:$0xff]  ;;  %v232_v17 = vld [vmem:[#allocation5 + $0x480] sm:$0xff]  ;;  %v4022_v24 = vcombine.low %v224_v10, %v228_v11 }
  0x81   :  { %2528 = vmatprep.subr.bf16.mxu0 %v3959_v14  ;;  %2692 = vmatprep.subr.bf16.mxu1 %v3961_v15  ;;  %v229_v14 = vld [vmem:[#allocation5 + $0x468] sm:$0xff]  ;;  %v236_v18 = vld [vmem:[#allocation5 + $0x4a0] sm:$0xff] }
  0x82   :  { %v4827_v15 = vld [vmem:[#allocation2 + $0x8] sm:$0xff]  ;;  %v4024_v25 = vcombine.low %v225_v13, %v229_v14  ;;  %v4031_v26 = vcombine.high %v232_v17, %v236_v18  ;;  %v4030_v32 = vcombine.low %v232_v17, %v236_v18  ;;  %v248_v33 = vld [vmem:[#allocation5 + $0x500] sm:$0xff] }
  0x83   :  { %v233_v53 = vld [vmem:[#allocation5 + $0x488] sm:$0xff]  ;;  %v252_v34 = vld [vmem:[#allocation5 + $0x520] sm:$0xff] }
  0x84   :  { %2529 = vmatpush1.bf16.msra.mxu0 %v3958_v20  ;;  %2693 = vmatpush1.bf16.msra.mxu1 %v3960_v21  ;;  %v4023_v20 = vcombine.high %v224_v10, %v228_v11  ;;  %v4025_v21 = vcombine.high %v225_v13, %v229_v14  ;;  %v256_v41 = vld [vmem:[#allocation5 + $0x540] sm:$0xff]  ;;  %v4046_v48 = vcombine.low %v248_v33, %v252_v34  ;;  %v289_v17 = vld [vmem:[#allocation5 + $0x648] sm:$0xff] }
  0x85   :  { %2530 = vmatprep.subr.bf16.mxu0 %v3967_v22  ;;  %2694 = vmatprep.subr.bf16.mxu1 %v3969_v23  ;;  %v4831_v22 = vcombine.high %v4827_v15, %v4827_v15  ;;  %v237_v23 = vld [vmem:[#allocation5 + $0x4a8] sm:$0xff]  ;;  %v260_v42 = vld [vmem:[#allocation5 + $0x560] sm:$0xff] }
  0x86   :  { %v4033_v27 = vcombine.high %v233_v53, %v237_v23  ;;  %v4032_v35 = vcombine.low %v233_v53, %v237_v23  ;;  %v4055_v50 = vcombine.high %v256_v41, %v260_v42  ;;  %v264_v51 = vld [vmem:[#allocation5 + $0x580] sm:$0xff]  ;;  %v4054_v58 = vcombine.low %v256_v41, %v260_v42  ;;  %v313_v41 = vld [vmem:[#allocation5 + $0x708] sm:$0xff] }
  0x87   :  { %v272_v61 = vld [vmem:[#allocation5 + $0x5c0] sm:$0xff] }
  0x88   :  { %2531 = vmatpush1.bf16.msra.mxu0 %v3966_v28  ;;  %2695 = vmatpush1.bf16.msra.mxu1 %v3968_v29  ;;  %v240_v28 = vld [vmem:[#allocation5 + $0x4c0] sm:$0xff] }
  0x89   :  { %2532 = vmatprep.subr.bf16.mxu0 %v3975_v30  ;;  %2696 = vmatprep.subr.bf16.mxu1 %v3977_v31  ;;  %v244_v29 = vld [vmem:[#allocation5 + $0x4e0] sm:$0xff]  ;;  %v241_v30 = vld [vmem:[#allocation5 + $0x4c8] sm:$0xff] }
  0x8a   :  { %v245_v31 = vld [vmem:[#allocation5 + $0x4e8] sm:$0xff]  ;;  %v4038_v40 = vcombine.low %v240_v28, %v244_v29  ;;  %v280_v5 = vld [vmem:[#allocation5 + $0x600] sm:$0xff] }
  0x8b   :  { %v4040_v43 = vcombine.low %v241_v30, %v245_v31  ;;  %v288_v14 = vld [vmem:[#allocation5 + $0x640] sm:$0xff] }
  0x8c   :  { %2533 = vmatpush1.bf16.msra.mxu0 %v3974_v36  ;;  %2697 = vmatpush1.bf16.msra.mxu1 %v3976_v37  ;;  %v4039_v36 = vcombine.high %v240_v28, %v244_v29  ;;  %v249_v37 = vld [vmem:[#allocation5 + $0x508] sm:$0xff]  ;;  %v296_v23 = vld [vmem:[#allocation5 + $0x680] sm:$0xff] }
  0x8d   :  { %2534 = vmatprep.subr.bf16.mxu0 %v3983_v38  ;;  %2698 = vmatprep.subr.bf16.mxu1 %v3985_v39  ;;  %v253_v38 = vld [vmem:[#allocation5 + $0x528] sm:$0xff]  ;;  %v4041_v39 = vcombine.high %v241_v30, %v245_v31  ;;  %v304_v31 = vld [vmem:[#allocation5 + $0x6c0] sm:$0xff] }
  0x8e   :  { %v4048_v49 = vcombine.low %v249_v37, %v253_v38 }
  0x90   :  { %2535 = vmatpush1.bf16.msra.mxu0 %v3982_v44  ;;  %2699 = vmatpush1.bf16.msra.mxu1 %v3984_v45  ;;  %v4047_v44 = vcombine.high %v248_v33, %v252_v34  ;;  %v257_v45 = vld [vmem:[#allocation5 + $0x548] sm:$0xff] }
  0x91   :  { %2536 = vmatprep.subr.bf16.mxu0 %v3991_v46  ;;  %2700 = vmatprep.subr.bf16.mxu1 %v3993_v47  ;;  %v261_v46 = vld [vmem:[#allocation5 + $0x568] sm:$0xff]  ;;  %v4049_v47 = vcombine.high %v249_v37, %v253_v38 }
  0x92   :  { %v4056_v59 = vcombine.low %v257_v45, %v261_v46  ;;  %v305_v33 = vld [vmem:[#allocation5 + $0x6c8] sm:$0xff] }
  0x94   :  { %2537 = vmatpush1.bf16.msra.mxu0 %v3990_v52  ;;  %2701 = vmatpush1.bf16.msra.mxu1 %v3992_v54  ;;  %v268_v52 = vld [vmem:[#allocation5 + $0x5a0] sm:$0xff]  ;;  %v265_v54 = vld [vmem:[#allocation5 + $0x588] sm:$0xff] }
  0x95   :  { %2538 = vmatprep.subr.bf16.mxu0 %v3999_v55  ;;  %2702 = vmatprep.subr.bf16.mxu1 %v4001_v56  ;;  %v4057_v55 = vcombine.high %v257_v45, %v261_v46  ;;  %v269_v56 = vld [vmem:[#allocation5 + $0x5a8] sm:$0xff]  ;;  %v4063_v60 = vcombine.high %v264_v51, %v268_v52  ;;  %v4062_v2 = vcombine.low %v264_v51, %v268_v52 }
  0x96   :  { %v4064_v3 = vcombine.low %v265_v54, %v269_v56  ;;  %v325_v51 = vld [vmem:[#allocation5 + $0x768] sm:$0xff] }
  0x98   :  { %2539 = vmatpush1.bf16.msra.mxu0 %v3998_v62  ;;  %2703 = vmatpush1.bf16.msra.mxu1 %v4000_v63  ;;  %v276_v62 = vld [vmem:[#allocation5 + $0x5e0] sm:$0xff]  ;;  %v273_v63 = vld [vmem:[#allocation5 + $0x5c8] sm:$0xff] }
  0x99   :  { %2540 = vmatprep.subr.bf16.mxu0 %v4007_v0  ;;  %2704 = vmatprep.subr.bf16.mxu1 %v4009_v1  ;;  %v4065_v0 = vcombine.high %v265_v54, %v269_v56  ;;  %v277_v1 = vld [vmem:[#allocation5 + $0x5e8] sm:$0xff]  ;;  %v4071_v4 = vcombine.high %v272_v61, %v276_v62  ;;  %v4070_v10 = vcombine.low %v272_v61, %v276_v62  ;;  %v328_v56 = vld [vmem:[#allocation5 + $0x780] sm:$0xff] }
  0x9a   :  { %v4072_v11 = vcombine.low %v273_v63, %v277_v1  ;;  %v333_v61 = vld [vmem:[#allocation5 + $0x7a8] sm:$0xff] }
  0x9c   :  { %2541 = vmatpush1.bf16.msra.mxu0 %v4006_v6  ;;  %2705 = vmatpush1.bf16.msra.mxu1 %v4008_v7  ;;  %v284_v6 = vld [vmem:[#allocation5 + $0x620] sm:$0xff]  ;;  %v281_v7 = vld [vmem:[#allocation5 + $0x608] sm:$0xff] }
  0x9d   :  { %2551 = vmatprep.subr.bf16.mxu0 %v4015_v8  ;;  %2715 = vmatprep.subr.bf16.mxu1 %v4017_v9  ;;  %v4073_v8 = vcombine.high %v273_v63, %v277_v1  ;;  %v285_v9 = vld [vmem:[#allocation5 + $0x628] sm:$0xff]  ;;  %v4079_v13 = vcombine.high %v280_v5, %v284_v6  ;;  %v336_v1 = vld [vmem:[#allocation5 + $0x7c0] sm:$0xff] }
  0x9e   :  { %v4081_v18 = vcombine.high %v281_v7, %v285_v9 }
  0x9f   :  { %2543 = vmatmul.mubr.bf16.vlgmr.msra.gmra.mrb[0].mxu0 %v4825_v12  ;;  %2707 = vmatmul.mubr.bf16.vlgmr.msra.gmra.mrb[0].mxu1 %v4825_v12 }
  0xa0   :  { %2552 = vmatpush1.bf16.msra.mxu0 %v4014_v16  ;;  %2716 = vmatpush1.bf16.msra.mxu1 %v4016_v19  ;;  %v292_v16 = vld [vmem:[#allocation5 + $0x660] sm:$0xff]  ;;  %v293_v19 = vld [vmem:[#allocation5 + $0x668] sm:$0xff] }
  0xa1   :  { %2553 = vmatprep.subr.bf16.mxu0 %v4023_v20  ;;  %2717 = vmatprep.subr.bf16.mxu1 %v4025_v21  ;;  %v4078_v20 = vcombine.low %v280_v5, %v284_v6  ;;  %v4080_v21 = vcombine.low %v281_v7, %v285_v9  ;;  %v4087_v53 = vcombine.high %v288_v14, %v292_v16  ;;  %v341_v5 = vld [vmem:[#allocation5 + $0x7e8] sm:$0xff]  ;;  %v344_v9 = vld [vmem:[#allocation5 + $0x800] sm:$0xff] }
  0xa2   :  { %2583 = vmatprep.mubr.bf16.mxu0 %v4831_v22  ;;  %2747 = vmatprep.mubr.bf16.mxu1 %v4831_v22  ;;  %v4086_v28 = vcombine.low %v288_v14, %v292_v16  ;;  %v4088_v29 = vcombine.low %v289_v17, %v293_v19  ;;  %v349_v14 = vld [vmem:[#allocation5 + $0x828] sm:$0xff] }
  0xa4   :  { %2554 = vmatpush1.bf16.msra.mxu0 %v4022_v24  ;;  %2718 = vmatpush1.bf16.msra.mxu1 %v4024_v25  ;;  %v300_v24 = vld [vmem:[#allocation5 + $0x6a0] sm:$0xff]  ;;  %v297_v25 = vld [vmem:[#allocation5 + $0x688] sm:$0xff] }
  0xa5   :  { %2555 = vmatprep.subr.bf16.mxu0 %v4031_v26  ;;  %2719 = vmatprep.subr.bf16.mxu1 %v4033_v27  ;;  %v4089_v26 = vcombine.high %v289_v17, %v293_v19  ;;  %v301_v27 = vld [vmem:[#allocation5 + $0x6a8] sm:$0xff]  ;;  %v4095_v30 = vcombine.high %v296_v23, %v300_v24  ;;  %v352_v19 = vld [vmem:[#allocation5 + $0x840] sm:$0xff] }
  0xa6   :  { %v4097_v34 = vcombine.high %v297_v25, %v301_v27  ;;  %v4096_v37 = vcombine.low %v297_v25, %v301_v27  ;;  %v4841_v25 = vld [vmem:[#allocation2 + $0x10] sm:$0xff] }
  0xa8   :  { %2556 = vmatpush1.bf16.msra.mxu0 %v4030_v32  ;;  %2720 = vmatpush1.bf16.msra.mxu1 %v4032_v35  ;;  %v308_v32 = vld [vmem:[#allocation5 + $0x6e0] sm:$0xff]  ;;  %v309_v35 = vld [vmem:[#allocation5 + $0x6e8] sm:$0xff] }
  0xa9   :  { %2557 = vmatprep.subr.bf16.mxu0 %v4039_v36  ;;  %2721 = vmatprep.subr.bf16.mxu1 %v4041_v39  ;;  %v4094_v36 = vcombine.low %v296_v23, %v300_v24  ;;  %v4103_v38 = vcombine.high %v304_v31, %v308_v32  ;;  %v312_v39 = vld [vmem:[#allocation5 + $0x700] sm:$0xff]  ;;  %v4105_v42 = vcombine.high %v305_v33, %v309_v35  ;;  %v357_v24 = vld [vmem:[#allocation5 + $0x868] sm:$0xff] }
  0xaa   :  { %v4104_v45 = vcombine.low %v305_v33, %v309_v35  ;;  %v4839_v23 = vcombine.low %v4827_v15, %v4827_v15  ;;  %v361_v15 = vld [vmem:[#allocation5 + $0x888] sm:$0xff] }
  0xab   :  { %v365_v33 = vld [vmem:[#allocation5 + $0x8a8] sm:$0xff] }
  0xac   :  { %2558 = vmatpush1.bf16.msra.mxu0 %v4038_v40  ;;  %2722 = vmatpush1.bf16.msra.mxu1 %v4040_v43  ;;  %v316_v40 = vld [vmem:[#allocation5 + $0x720] sm:$0xff]  ;;  %v317_v43 = vld [vmem:[#allocation5 + $0x728] sm:$0xff] }
  0xad   :  { %2559 = vmatprep.subr.bf16.mxu0 %v4047_v44  ;;  %2723 = vmatprep.subr.bf16.mxu1 %v4049_v47  ;;  %v4102_v44 = vcombine.low %v304_v31, %v308_v32  ;;  %v4111_v46 = vcombine.high %v312_v39, %v316_v40  ;;  %v320_v47 = vld [vmem:[#allocation5 + $0x740] sm:$0xff]  ;;  %v4110_v52 = vcombine.low %v312_v39, %v316_v40  ;;  %v369_v40 = vld [vmem:[#allocation5 + $0x8c8] sm:$0xff] }
  0xae   :  { %v4112_v54 = vcombine.low %v313_v41, %v317_v43  ;;  %v364_v31 = vld [vmem:[#allocation5 + $0x8a0] sm:$0xff]  ;;  %v4845_v32 = vcombine.high %v4841_v25, %v4841_v25 }
  0xaf   :  { %v372_v39 = vld [vmem:[#allocation5 + $0x8e0] sm:$0xff] }
  0xb0   :  { %2560 = vmatpush1.bf16.msra.mxu0 %v4046_v48  ;;  %2724 = vmatpush1.bf16.msra.mxu1 %v4048_v49  ;;  %v324_v48 = vld [vmem:[#allocation5 + $0x760] sm:$0xff]  ;;  %v321_v49 = vld [vmem:[#allocation5 + $0x748] sm:$0xff] }
  0xb1   :  { %2561 = vmatprep.subr.bf16.mxu0 %v4055_v50  ;;  %2725 = vmatprep.subr.bf16.mxu1 %v4057_v55  ;;  %v4113_v50 = vcombine.high %v313_v41, %v317_v43  ;;  %v4119_v55 = vcombine.high %v320_v47, %v324_v48  ;;  %v4118_v62 = vcombine.low %v320_v47, %v324_v48  ;;  %v373_v41 = vld [vmem:[#allocation5 + $0x8e8] sm:$0xff]  ;;  %v380_v47 = vld [vmem:[#allocation5 + $0x920] sm:$0xff] }
  0xb2   :  { %v4120_v63 = vcombine.low %v321_v49, %v325_v51  ;;  %v4160_v43 = vcombine.low %v361_v15, %v365_v33  ;;  %v377_v48 = vld [vmem:[#allocation5 + $0x908] sm:$0xff] }
  0xb4   :  { %2562 = vmatpush1.bf16.msra.mxu0 %v4054_v58  ;;  %2726 = vmatpush1.bf16.msra.mxu1 %v4056_v59  ;;  %v332_v58 = vld [vmem:[#allocation5 + $0x7a0] sm:$0xff]  ;;  %v329_v59 = vld [vmem:[#allocation5 + $0x788] sm:$0xff] }
  0xb5   :  { %2563 = vmatprep.subr.bf16.mxu0 %v4063_v60  ;;  %2727 = vmatprep.subr.bf16.mxu1 %v4065_v0  ;;  %v4121_v60 = vcombine.high %v321_v49, %v325_v51  ;;  %v4127_v0 = vcombine.high %v328_v56, %v332_v58  ;;  %v4126_v6 = vcombine.low %v328_v56, %v332_v58  ;;  %v381_v49 = vld [vmem:[#allocation5 + $0x928] sm:$0xff]  ;;  %v388_v56 = vld [vmem:[#allocation5 + $0x960] sm:$0xff] }
  0xb6   :  { %v4128_v7 = vcombine.low %v329_v59, %v333_v61  ;;  %v4168_v51 = vcombine.low %v369_v40, %v373_v41  ;;  %v385_v58 = vld [vmem:[#allocation5 + $0x948] sm:$0xff] }
  0xb8   :  { %2564 = vmatpush1.bf16.msra.mxu0 %v4062_v2  ;;  %2728 = vmatpush1.bf16.msra.mxu1 %v4064_v3  ;;  %v340_v2 = vld [vmem:[#allocation5 + $0x7e0] sm:$0xff]  ;;  %v337_v3 = vld [vmem:[#allocation5 + $0x7c8] sm:$0xff] }
  0xb9   :  { %2565 = vmatprep.subr.bf16.mxu0 %v4071_v4  ;;  %2729 = vmatprep.subr.bf16.mxu1 %v4073_v8  ;;  %v4129_v4 = vcombine.high %v329_v59, %v333_v61  ;;  %v4135_v8 = vcombine.high %v336_v1, %v340_v2  ;;  %v4134_v16 = vcombine.low %v336_v1, %v340_v2  ;;  %v389_v59 = vld [vmem:[#allocation5 + $0x968] sm:$0xff]  ;;  %v396_v1 = vld [vmem:[#allocation5 + $0x9a0] sm:$0xff] }
  0xba   :  { %v4136_v17 = vcombine.low %v337_v3, %v341_v5  ;;  %v4176_v61 = vcombine.low %v377_v48, %v381_v49  ;;  %v393_v2 = vld [vmem:[#allocation5 + $0x988] sm:$0xff] }
  0xbc   :  { %2566 = vmatpush1.bf16.msra.mxu0 %v4070_v10  ;;  %2730 = vmatpush1.bf16.msra.mxu1 %v4072_v11  ;;  %v348_v10 = vld [vmem:[#allocation5 + $0x820] sm:$0xff]  ;;  %v345_v11 = vld [vmem:[#allocation5 + $0x808] sm:$0xff] }
  0xbd   :  { %2567 = vmatprep.subr.bf16.mxu0 %v4079_v13  ;;  %2731 = vmatprep.subr.bf16.mxu1 %v4081_v18  ;;  %v4137_v13 = vcombine.high %v337_v3, %v341_v5  ;;  %v4143_v18 = vcombine.high %v344_v9, %v348_v10  ;;  %v4144_v27 = vcombine.low %v345_v11, %v349_v14  ;;  %v397_v3 = vld [vmem:[#allocation5 + $0x9a8] sm:$0xff] }
  0xbe   :  { %v4184_v5 = vcombine.low %v385_v58, %v389_v59 }
  0xc0   :  { %2568 = vmatpush1.bf16.msra.mxu0 %v4078_v20  ;;  %2732 = vmatpush1.bf16.msra.mxu1 %v4080_v21  ;;  %v356_v20 = vld [vmem:[#allocation5 + $0x860] sm:$0xff]  ;;  %v4145_v21 = vcombine.high %v345_v11, %v349_v14  ;;  %v405_v11 = vld [vmem:[#allocation5 + $0x9e8] sm:$0xff]  ;;  %v4192_v14 = vcombine.low %v393_v2, %v397_v3 }
  0xc1   :  { %2569 = vmatprep.subr.bf16.mxu0 %v4087_v53  ;;  %2733 = vmatprep.subr.bf16.mxu1 %v4089_v26  ;;  %v353_v53 = vld [vmem:[#allocation5 + $0x848] sm:$0xff]  ;;  %v4142_v26 = vcombine.low %v344_v9, %v348_v10  ;;  %v404_v9 = vld [vmem:[#allocation5 + $0x9e0] sm:$0xff] }
  0xc2   :  { %v4152_v35 = vcombine.low %v353_v53, %v357_v24  ;;  %v401_v10 = vld [vmem:[#allocation5 + $0x9c8] sm:$0xff] }
  0xc4   :  { %2570 = vmatpush1.bf16.msra.mxu0 %v4086_v28  ;;  %2734 = vmatpush1.bf16.msra.mxu1 %v4088_v29  ;;  %v4151_v28 = vcombine.high %v352_v19, %v356_v20  ;;  %v4153_v29 = vcombine.high %v353_v53, %v357_v24  ;;  %v4200_v24 = vcombine.low %v401_v10, %v405_v11 }
  0xc5   :  { %2571 = vmatprep.subr.bf16.mxu0 %v4095_v30  ;;  %2735 = vmatprep.subr.bf16.mxu1 %v4097_v34  ;;  %v360_v30 = vld [vmem:[#allocation5 + $0x880] sm:$0xff]  ;;  %v4150_v34 = vcombine.low %v352_v19, %v356_v20  ;;  %v409_v20 = vld [vmem:[#allocation5 + $0xa08] sm:$0xff] }
  0xc6   :  { %v412_v19 = vld [vmem:[#allocation5 + $0xa20] sm:$0xff] }
  0xc8   :  { %2572 = vmatpush1.bf16.msra.mxu0 %v4094_v36  ;;  %2736 = vmatpush1.bf16.msra.mxu1 %v4096_v37  ;;  %v4159_v36 = vcombine.high %v360_v30, %v364_v31  ;;  %v4161_v37 = vcombine.high %v361_v15, %v365_v33 }
  0xc9   :  { %2573 = vmatprep.subr.bf16.mxu0 %v4103_v38  ;;  %2737 = vmatprep.subr.bf16.mxu1 %v4105_v42  ;;  %v368_v38 = vld [vmem:[#allocation5 + $0x8c0] sm:$0xff]  ;;  %v4158_v42 = vcombine.low %v360_v30, %v364_v31  ;;  %v417_v30 = vld [vmem:[#allocation5 + $0xa48] sm:$0xff] }
  0xca   :  { %v421_v31 = vld [vmem:[#allocation5 + $0xa68] sm:$0xff] }
  0xcc   :  { %2574 = vmatpush1.bf16.msra.mxu0 %v4102_v44  ;;  %2738 = vmatpush1.bf16.msra.mxu1 %v4104_v45  ;;  %v4167_v44 = vcombine.high %v368_v38, %v372_v39  ;;  %v4169_v45 = vcombine.high %v369_v40, %v373_v41  ;;  %v4216_v41 = vcombine.low %v417_v30, %v421_v31 }
  0xcd   :  { %2575 = vmatprep.subr.bf16.mxu0 %v4111_v46  ;;  %2739 = vmatprep.subr.bf16.mxu1 %v4113_v50  ;;  %v376_v46 = vld [vmem:[#allocation5 + $0x900] sm:$0xff]  ;;  %v4166_v50 = vcombine.low %v368_v38, %v372_v39  ;;  %v425_v38 = vld [vmem:[#allocation5 + $0xa88] sm:$0xff] }
  0xce   :  { %v429_v39 = vld [vmem:[#allocation5 + $0xaa8] sm:$0xff] }
  0xd0   :  { %2576 = vmatpush1.bf16.msra.mxu0 %v4110_v52  ;;  %2740 = vmatpush1.bf16.msra.mxu1 %v4112_v54  ;;  %v4175_v52 = vcombine.high %v376_v46, %v380_v47  ;;  %v4177_v54 = vcombine.high %v377_v48, %v381_v49  ;;  %v4224_v49 = vcombine.low %v425_v38, %v429_v39 }
  0xd1   :  { %2577 = vmatprep.subr.bf16.mxu0 %v4119_v55  ;;  %2741 = vmatprep.subr.bf16.mxu1 %v4121_v60  ;;  %v384_v55 = vld [vmem:[#allocation5 + $0x940] sm:$0xff]  ;;  %v4174_v60 = vcombine.low %v376_v46, %v380_v47  ;;  %v433_v46 = vld [vmem:[#allocation5 + $0xac8] sm:$0xff] }
  0xd2   :  { %v437_v47 = vld [vmem:[#allocation5 + $0xae8] sm:$0xff] }
  0xd4   :  { %2578 = vmatpush1.bf16.msra.mxu0 %v4118_v62  ;;  %2742 = vmatpush1.bf16.msra.mxu1 %v4120_v63  ;;  %v4183_v62 = vcombine.high %v384_v55, %v388_v56  ;;  %v4185_v63 = vcombine.high %v385_v58, %v389_v59  ;;  %v4232_v59 = vcombine.low %v433_v46, %v437_v47 }
  0xd5   :  { %2579 = vmatprep.subr.bf16.mxu0 %v4127_v0  ;;  %2743 = vmatprep.subr.bf16.mxu1 %v4129_v4  ;;  %v392_v0 = vld [vmem:[#allocation5 + $0x980] sm:$0xff]  ;;  %v4182_v4 = vcombine.low %v384_v55, %v388_v56  ;;  %v441_v55 = vld [vmem:[#allocation5 + $0xb08] sm:$0xff] }
  0xd6   :  { %v445_v56 = vld [vmem:[#allocation5 + $0xb28] sm:$0xff] }
  0xd8   :  { %2580 = vmatpush1.bf16.msra.mxu0 %v4126_v6  ;;  %2744 = vmatpush1.bf16.msra.mxu1 %v4128_v7  ;;  %v4191_v6 = vcombine.high %v392_v0, %v396_v1  ;;  %v4193_v7 = vcombine.high %v393_v2, %v397_v3  ;;  %v4240_v3 = vcombine.low %v441_v55, %v445_v56 }
  0xd9   :  { %2581 = vmatprep.subr.bf16.mxu0 %v4135_v8  ;;  %2745 = vmatprep.subr.bf16.mxu1 %v4137_v13  ;;  %v400_v8 = vld [vmem:[#allocation5 + $0x9c0] sm:$0xff]  ;;  %v4190_v13 = vcombine.low %v392_v0, %v396_v1  ;;  %v449_v0 = vld [vmem:[#allocation5 + $0xb48] sm:$0xff] }
  0xda   :  { %v4198_v53 = vcombine.low %v400_v8, %v404_v9  ;;  %v453_v1 = vld [vmem:[#allocation5 + $0xb68] sm:$0xff] }
  0xdc   :  { %2582 = vmatpush1.bf16.msra.mxu0 %v4134_v16  ;;  %2746 = vmatpush1.bf16.msra.mxu1 %v4136_v17  ;;  %v4199_v16 = vcombine.high %v400_v8, %v404_v9  ;;  %v4201_v17 = vcombine.high %v401_v10, %v405_v11  ;;  %v457_v8 = vld [vmem:[#allocation5 + $0xb88] sm:$0xff]  ;;  %v4248_v11 = vcombine.low %v449_v0, %v453_v1 }
  0xdd   :  { %2592 = vmatprep.subr.bf16.mxu0 %v4143_v18  ;;  %2756 = vmatprep.subr.bf16.mxu1 %v4145_v21  ;;  %v408_v18 = vld [vmem:[#allocation5 + $0xa00] sm:$0xff]  ;;  %v413_v21 = vld [vmem:[#allocation5 + $0xa28] sm:$0xff] }
  0xde   :  { %v4206_v15 = vcombine.low %v408_v18, %v412_v19  ;;  %v4208_v33 = vcombine.low %v409_v20, %v413_v21  ;;  %v461_v9 = vld [vmem:[#allocation5 + $0xba8] sm:$0xff] }
  0xdf   :  { %2584 = vmatmul.mubr.bf16.vlgmr.msra.gmra.mrb[0].mxu0 %v4839_v23  ;;  %2748 = vmatmul.mubr.bf16.vlgmr.msra.gmra.mrb[0].mxu1 %v4839_v23 }
  0xe0   :  { %2593 = vmatpush1.bf16.msra.mxu0 %v4142_v26  ;;  %2757 = vmatpush1.bf16.msra.mxu1 %v4144_v27  ;;  %v4207_v26 = vcombine.high %v408_v18, %v412_v19  ;;  %v4209_v27 = vcombine.high %v409_v20, %v413_v21  ;;  %v465_v18 = vld [vmem:[#allocation5 + $0xbc8] sm:$0xff]  ;;  %v4256_v21 = vcombine.low %v457_v8, %v461_v9 }
  0xe1   :  { %2594 = vmatprep.subr.bf16.mxu0 %v4151_v28  ;;  %2758 = vmatprep.subr.bf16.mxu1 %v4153_v29  ;;  %v416_v28 = vld [vmem:[#allocation5 + $0xa40] sm:$0xff]  ;;  %v469_v19 = vld [vmem:[#allocation5 + $0xbe8] sm:$0xff] }
  0xe2   :  { %2624 = vmatprep.mubr.bf16.mxu0 %v4845_v32  ;;  %2788 = vmatprep.mubr.bf16.mxu1 %v4845_v32  ;;  %v420_v29 = vld [vmem:[#allocation5 + $0xa60] sm:$0xff] }
  0xe3   :  { %v4214_v40 = vcombine.low %v416_v28, %v420_v29 }
  0xe4   :  { %2595 = vmatpush1.bf16.msra.mxu0 %v4150_v34  ;;  %2759 = vmatpush1.bf16.msra.mxu1 %v4152_v35  ;;  %v4215_v34 = vcombine.high %v416_v28, %v420_v29  ;;  %v4217_v35 = vcombine.high %v417_v30, %v421_v31  ;;  %v473_v28 = vld [vmem:[#allocation5 + $0xc08] sm:$0xff]  ;;  %v4264_v31 = vcombine.low %v465_v18, %v469_v19 }
  0xe5   :  { %2596 = vmatprep.subr.bf16.mxu0 %v4159_v36  ;;  %2760 = vmatprep.subr.bf16.mxu1 %v4161_v37  ;;  %v424_v36 = vld [vmem:[#allocation5 + $0xa80] sm:$0xff]  ;;  %v477_v29 = vld [vmem:[#allocation5 + $0xc28] sm:$0xff] }
  0xe6   :  { %v428_v37 = vld [vmem:[#allocation5 + $0xaa0] sm:$0xff] }
  0xe7   :  { %v4222_v48 = vcombine.low %v424_v36, %v428_v37 }
  0xe8   :  { %2597 = vmatpush1.bf16.msra.mxu0 %v4158_v42  ;;  %2761 = vmatpush1.bf16.msra.mxu1 %v4160_v43  ;;  %v4223_v42 = vcombine.high %v424_v36, %v428_v37  ;;  %v4225_v43 = vcombine.high %v425_v38, %v429_v39  ;;  %v94_v36 = vld [vmem:[#allocation5 + $0x30] sm:$0xff]  ;;  %v91_v38 = vld [vmem:[#allocation5 + $0x18] sm:$0xff] }
  0xe9   :  { %2598 = vmatprep.subr.bf16.mxu0 %v4167_v44  ;;  %2762 = vmatprep.subr.bf16.mxu1 %v4169_v45  ;;  %v432_v44 = vld [vmem:[#allocation5 + $0xac0] sm:$0xff]  ;;  %v95_v39 = vld [vmem:[#allocation5 + $0x38] sm:$0xff] }
  0xea   :  { %v436_v45 = vld [vmem:[#allocation5 + $0xae0] sm:$0xff] }
  0xeb   :  { %v4230_v58 = vcombine.low %v432_v44, %v436_v45 }
  0xec   :  { %2599 = vmatpush1.bf16.msra.mxu0 %v4166_v50  ;;  %2763 = vmatpush1.bf16.msra.mxu1 %v4168_v51  ;;  %v4231_v50 = vcombine.high %v432_v44, %v436_v45  ;;  %v4233_v51 = vcombine.high %v433_v46, %v437_v47  ;;  %v102_v44 = vld [vmem:[#allocation5 + $0x70] sm:$0xff]  ;;  %v4508_v45 = vld [vmem:[#allocation2 + $0x18] ss:$0 sps:$4 sm:$0xff]  }
  0xed   :  { %2600 = vmatprep.subr.bf16.mxu0 %v4175_v52  ;;  %2764 = vmatprep.subr.bf16.mxu1 %v4177_v54  ;;  %v440_v52 = vld [vmem:[#allocation5 + $0xb00] sm:$0xff]  ;;  %v99_v46 = vld [vmem:[#allocation5 + $0x58] sm:$0xff] }
  0xee   :  { %v444_v54 = vld [vmem:[#allocation5 + $0xb20] sm:$0xff]  ;;  %v103_v47 = vld [vmem:[#allocation5 + $0x78] sm:$0xff] }
  0xef   :  { %v4238_v2 = vcombine.low %v440_v52, %v444_v54 }
  0xf0   :  { %2601 = vmatpush1.bf16.msra.mxu0 %v4174_v60  ;;  %2765 = vmatpush1.bf16.msra.mxu1 %v4176_v61  ;;  %v4239_v60 = vcombine.high %v440_v52, %v444_v54  ;;  %v4241_v61 = vcombine.high %v441_v55, %v445_v56  ;;  %v106_v52 = vld [vmem:[#allocation5 + $0x90] sm:$0xff]  ;;  %v107_v55 = vld [vmem:[#allocation5 + $0x98] sm:$0xff] }
  0xf1   :  { %2602 = vmatprep.subr.bf16.mxu0 %v4183_v62  ;;  %2766 = vmatprep.subr.bf16.mxu1 %v4185_v63  ;;  %v448_v62 = vld [vmem:[#allocation5 + $0xb40] sm:$0xff]  ;;  %v110_v54 = vld [vmem:[#allocation5 + $0xb0] sm:$0xff]  ;;  %v111_v56 = vld [vmem:[#allocation5 + $0xb8] sm:$0xff] }
  0xf2   :  { %v452_v63 = vld [vmem:[#allocation5 + $0xb60] sm:$0xff] }
  0xf3   :  { %v4246_v10 = vcombine.low %v448_v62, %v452_v63 }
  0xf4   :  { %2603 = vmatpush1.bf16.msra.mxu0 %v4182_v4  ;;  %2767 = vmatpush1.bf16.msra.mxu1 %v4184_v5  ;;  %v4247_v4 = vcombine.high %v448_v62, %v452_v63  ;;  %v4249_v5 = vcombine.high %v449_v0, %v453_v1  ;;  %v114_v62 = vld [vmem:[#allocation5 + $0xd0] sm:$0xff]  ;;  %v115_v0 = vld [vmem:[#allocation5 + $0xd8] sm:$0xff] }
  0xf5   :  { %2604 = vmatprep.subr.bf16.mxu0 %v4191_v6  ;;  %2768 = vmatprep.subr.bf16.mxu1 %v4193_v7  ;;  %v456_v6 = vld [vmem:[#allocation5 + $0xb80] sm:$0xff]  ;;  %v118_v63 = vld [vmem:[#allocation5 + $0xf0] sm:$0xff]  ;;  %v119_v1 = vld [vmem:[#allocation5 + $0xf8] sm:$0xff] }
  0xf6   :  { %v460_v7 = vld [vmem:[#allocation5 + $0xba0] sm:$0xff] }
  0xf7   :  { %v4254_v20 = vcombine.low %v456_v6, %v460_v7 }
  0xf8   :  { %2605 = vmatpush1.bf16.msra.mxu0 %v4190_v13  ;;  %2769 = vmatpush1.bf16.msra.mxu1 %v4192_v14  ;;  %v4255_v13 = vcombine.high %v456_v6, %v460_v7  ;;  %v4257_v14 = vcombine.high %v457_v8, %v461_v9  ;;  %v122_v6 = vld [vmem:[#allocation5 + $0x110] sm:$0xff]  ;;  %v123_v8 = vld [vmem:[#allocation5 + $0x118] sm:$0xff] }
  0xf9   :  { %2606 = vmatprep.subr.bf16.mxu0 %v4199_v16  ;;  %2770 = vmatprep.subr.bf16.mxu1 %v4201_v17  ;;  %v464_v16 = vld [vmem:[#allocation5 + $0xbc0] sm:$0xff]  ;;  %v126_v7 = vld [vmem:[#allocation5 + $0x130] sm:$0xff]  ;;  %v127_v9 = vld [vmem:[#allocation5 + $0x138] sm:$0xff] }
  0xfa   :  { %v468_v17 = vld [vmem:[#allocation5 + $0xbe0] sm:$0xff] }
  0xfb   :  { %v4262_v30 = vcombine.low %v464_v16, %v468_v17 }
  0xfc   :  { %2607 = vmatpush1.bf16.msra.mxu0 %v4198_v53  ;;  %2771 = vmatpush1.bf16.msra.mxu1 %v4200_v24  ;;  %v4263_v53 = vcombine.high %v464_v16, %v468_v17  ;;  %v4265_v24 = vcombine.high %v465_v18, %v469_v19  ;;  %v134_v16 = vld [vmem:[#allocation5 + $0x170] sm:$0xff]  ;;  %v131_v17 = vld [vmem:[#allocation5 + $0x158] sm:$0xff]  ;;  %v3922_v19 = vcombine.low %v122_v6, %v126_v7 }
  0xfd   :  { %2608 = vmatprep.subr.bf16.mxu0 %v4207_v26  ;;  %2772 = vmatprep.subr.bf16.mxu1 %v4209_v27  ;;  %v472_v26 = vld [vmem:[#allocation5 + $0xc00] sm:$0xff]  ;;  %v135_v18 = vld [vmem:[#allocation5 + $0x178] sm:$0xff] }
  0xfe   :  { %v476_v27 = vld [vmem:[#allocation5 + $0xc20] sm:$0xff] }
  0xff   :  { %v4270_v37 = vcombine.low %v472_v26, %v476_v27 }
 0x100   :  { %2609 = vmatpush1.bf16.msra.mxu0 %v4206_v15  ;;  %2773 = vmatpush1.bf16.msra.mxu1 %v4208_v33  ;;  %v4271_v15 = vcombine.high %v472_v26, %v476_v27  ;;  %v4273_v33 = vcombine.high %v473_v28, %v477_v29  ;;  %v142_v26 = vld [vmem:[#allocation5 + $0x1b0] sm:$0xff]  ;;  %v139_v27 = vld [vmem:[#allocation5 + $0x198] sm:$0xff] }
 0x101   :  { %2610 = vmatprep.subr.bf16.mxu0 %v4215_v34  ;;  %2774 = vmatprep.subr.bf16.mxu1 %v4217_v35  ;;  %v4853_v34 = vcombine.low %v4841_v25, %v4841_v25  ;;  %v90_v35 = vld [vmem:[#allocation5 + $0x10] sm:$0xff]  ;;  %v4723_v25 = vmov 0  }
 0x104   :  { %2611 = vmatpush1.bf16.msra.mxu0 %v4214_v40  ;;  %2775 = vmatpush1.bf16.msra.mxu1 %v4216_v41  ;;  %v4272_v40 = vcombine.low %v473_v28, %v477_v29  ;;  %v3891_v41 = vcombine.high %v90_v35, %v94_v36  ;;  %v143_v28 = vld [vmem:[#allocation5 + $0x1b8] sm:$0xff] }
 0x105   :  { %2612 = vmatprep.subr.bf16.mxu0 %v4223_v42  ;;  %2776 = vmatprep.subr.bf16.mxu1 %v4225_v43  ;;  %v3893_v42 = vcombine.high %v91_v38, %v95_v39  ;;  %v98_v43 = vld [vmem:[#allocation5 + $0x50] sm:$0xff] }
 0x108   :  { %2613 = vmatpush1.bf16.msra.mxu0 %v4222_v48  ;;  %2777 = vmatpush1.bf16.msra.mxu1 %v4224_v49  ;;  %v3890_v48 = vcombine.low %v90_v35, %v94_v36  ;;  %v3892_v49 = vcombine.low %v91_v38, %v95_v39  ;;  %v150_v35 = vld [vmem:[#allocation5 + $0x1f0] sm:$0xff]  ;;  %v147_v36 = vld [vmem:[#allocation5 + $0x1d8] sm:$0xff]  ;;  %v3940_v39 = vcombine.low %v139_v27, %v143_v28 }
 0x109   :  { %2614 = vmatprep.subr.bf16.mxu0 %v4231_v50  ;;  %2778 = vmatprep.subr.bf16.mxu1 %v4233_v51  ;;  %v3899_v50 = vcombine.high %v98_v43, %v102_v44  ;;  %v3901_v51 = vcombine.high %v99_v46, %v103_v47 }
 0x10c   :  { %2615 = vmatpush1.bf16.msra.mxu0 %v4230_v58  ;;  %2779 = vmatpush1.bf16.msra.mxu1 %v4232_v59  ;;  %v3898_v58 = vcombine.low %v98_v43, %v102_v44  ;;  %v3900_v59 = vcombine.low %v99_v46, %v103_v47  ;;  %v158_v43 = vld [vmem:[#allocation5 + $0x230] sm:$0xff]  ;;  %v155_v44 = vld [vmem:[#allocation5 + $0x218] sm:$0xff] }
 0x10d   :  { %2616 = vmatprep.subr.bf16.mxu0 %v4239_v60  ;;  %2780 = vmatprep.subr.bf16.mxu1 %v4241_v61  ;;  %v3907_v60 = vcombine.high %v106_v52, %v110_v54  ;;  %v3909_v61 = vcombine.high %v107_v55, %v111_v56 }
 0x110   :  { %2617 = vmatpush1.bf16.msra.mxu0 %v4238_v2  ;;  %2781 = vmatpush1.bf16.msra.mxu1 %v4240_v3  ;;  %v3906_v2 = vcombine.low %v106_v52, %v110_v54  ;;  %v3908_v3 = vcombine.low %v107_v55, %v111_v56  ;;  %v163_v52 = vld [vmem:[#allocation5 + $0x258] sm:$0xff] }
 0x111   :  { %2618 = vmatprep.subr.bf16.mxu0 %v4247_v4  ;;  %2782 = vmatprep.subr.bf16.mxu1 %v4249_v5  ;;  %v3915_v4 = vcombine.high %v114_v62, %v118_v63  ;;  %v3917_v5 = vcombine.high %v115_v0, %v119_v1  ;;  %v167_v54 = vld [vmem:[#allocation5 + $0x278] sm:$0xff] }
 0x114   :  { %2619 = vmatpush1.bf16.msra.mxu0 %v4246_v10  ;;  %2783 = vmatpush1.bf16.msra.mxu1 %v4248_v11  ;;  %v3914_v10 = vcombine.low %v114_v62, %v118_v63  ;;  %v3916_v11 = vcombine.low %v115_v0, %v119_v1  ;;  %v171_v62 = vld [vmem:[#allocation5 + $0x298] sm:$0xff]  ;;  %v3964_v1 = vcombine.low %v163_v52, %v167_v54 }
 0x115   :  { %2620 = vmatprep.subr.bf16.mxu0 %v4255_v13  ;;  %2784 = vmatprep.subr.bf16.mxu1 %v4257_v14  ;;  %v3923_v13 = vcombine.high %v122_v6, %v126_v7  ;;  %v130_v14 = vld [vmem:[#allocation5 + $0x150] sm:$0xff]  ;;  %v175_v63 = vld [vmem:[#allocation5 + $0x2b8] sm:$0xff] }
 0x116   :  { %v3930_v29 = vcombine.low %v130_v14, %v134_v16  ;;  %v179_v6 = vld [vmem:[#allocation5 + $0x2d8] sm:$0xff] }
 0x117   :  { %v183_v7 = vld [vmem:[#allocation5 + $0x2f8] sm:$0xff] }
 0x118   :  { %2621 = vmatpush1.bf16.msra.mxu0 %v4254_v20  ;;  %2785 = vmatpush1.bf16.msra.mxu1 %v4256_v21  ;;  %v3924_v20 = vcombine.low %v123_v8, %v127_v9  ;;  %v3931_v21 = vcombine.high %v130_v14, %v134_v16  ;;  %v187_v14 = vld [vmem:[#allocation5 + $0x318] sm:$0xff] }
 0x119   :  { %2622 = vmatprep.subr.bf16.mxu0 %v4263_v53  ;;  %2786 = vmatprep.subr.bf16.mxu1 %v4265_v24  ;;  %v3933_v53 = vcombine.high %v131_v17, %v135_v18  ;;  %v138_v24 = vld [vmem:[#allocation5 + $0x190] sm:$0xff]  ;;  %v191_v16 = vld [vmem:[#allocation5 + $0x338] sm:$0xff] }
 0x11a   :  { %v3938_v38 = vcombine.low %v138_v24, %v142_v26 }
 0x11c   :  { %2623 = vmatpush1.bf16.msra.mxu0 %v4262_v30  ;;  %2787 = vmatpush1.bf16.msra.mxu1 %v4264_v31  ;;  %v3932_v30 = vcombine.low %v131_v17, %v135_v18  ;;  %v3939_v31 = vcombine.high %v138_v24, %v142_v26  ;;  %v3980_v18 = vcombine.low %v179_v6, %v183_v7  ;;  %v195_v24 = vld [vmem:[#allocation5 + $0x358] sm:$0xff] }
 0x11d   :  { %2633 = vmatprep.subr.bf16.mxu0 %v4271_v15  ;;  %2797 = vmatprep.subr.bf16.mxu1 %v4273_v33  ;;  %v3941_v15 = vcombine.high %v139_v27, %v143_v28  ;;  %v146_v33 = vld [vmem:[#allocation5 + $0x1d0] sm:$0xff]  ;;  %v199_v26 = vld [vmem:[#allocation5 + $0x378] sm:$0xff]  ;;  %v3988_v28 = vcombine.low %v187_v14, %v191_v16 }
 0x11e   :  { %v3946_v46 = vcombine.low %v146_v33, %v150_v35 }
 0x11f   :  { %2625 = vmatmul.mubr.bf16.vlgmr.msra.gmra.mrb[0].mxu0 %v4853_v34  ;;  %2789 = vmatmul.mubr.bf16.vlgmr.msra.gmra.mrb[0].mxu1 %v4853_v34 }
 0x120   :  { %2634 = vmatpush1.bf16.msra.mxu0 %v4270_v37  ;;  %2798 = vmatpush1.bf16.msra.mxu1 %v4272_v40  ;;  %v151_v37 = vld [vmem:[#allocation5 + $0x1f8] sm:$0xff]  ;;  %v3947_v40 = vcombine.high %v146_v33, %v150_v35 }
 0x121   :  { %2665 = vmatprep.mubr.bf16.mxu0 %v4723_v25  ;;  %2829 = vmatprep.mubr.bf16.mxu1 %v4723_v25  ;;  %v3948_v47 = vcombine.low %v147_v36, %v151_v37  ;;  %v203_v33 = vld [vmem:[#allocation5 + $0x398] sm:$0xff] }
 0x122   :  { %2838 = vmatprep.subr.bf16.mxu0 %v3891_v41  ;;  %3002 = vmatprep.subr.bf16.mxu1 %v3893_v42  ;;  %v3949_v41 = vcombine.high %v147_v36, %v151_v37  ;;  %v154_v42 = vld [vmem:[#allocation5 + $0x210] sm:$0xff]  ;;  %v207_v35 = vld [vmem:[#allocation5 + $0x3b8] sm:$0xff]  ;;  %v3996_v37 = vcombine.low %v195_v24, %v199_v26 }
 0x123   :  { %v3954_v55 = vcombine.low %v154_v42, %v158_v43 }
 0x12b   :  { %4278 = vmatmul.mubr.msk.bf16.vlgmr.msra.gmra.mrb[0].mxu0 %vm2506_vm0, %v4508_v45  ;;  %4279 = vmatmul.mubr.msk.bf16.vlgmr.msra.gmra.mrb[0].mxu1 %vm2506_vm0, %v4508_v45  ;;  %v159_v45 = vld [vmem:[#allocation5 + $0x238] sm:$0xff] }
 0x12c   :  { %2839 = vmatpush1.bf16.msra.mxu0 %v3890_v48  ;;  %3003 = vmatpush1.bf16.msra.mxu1 %v3892_v49  ;;  %v3955_v48 = vcombine.high %v154_v42, %v158_v43  ;;  %v3957_v49 = vcombine.high %v155_v44, %v159_v45  ;;  %v3956_v56 = vcombine.low %v155_v44, %v159_v45  ;;  %v211_v42 = vld [vmem:[#allocation5 + $0x3d8] sm:$0xff] }
 0x12d   :  { %2840 = vmatprep.subr.bf16.mxu0 %v3899_v50  ;;  %3004 = vmatprep.subr.bf16.mxu1 %v3901_v51  ;;  %v162_v50 = vld [vmem:[#allocation5 + $0x250] sm:$0xff]  ;;  %v215_v43 = vld [vmem:[#allocation5 + $0x3f8] sm:$0xff]  ;;  %v4004_v45 = vcombine.low %v203_v33, %v207_v35 }
 0x12e   :  { %2870 = vmatprep.mubr.bf16.mxu0 %v4819_v57  ;;  %3034 = vmatprep.mubr.bf16.mxu1 %v4819_v57  ;;  %v3925_v57 = vcombine.high %v123_v8, %v127_v9  ;;  %v166_v51 = vld [vmem:[#allocation5 + $0x270] sm:$0xff]  ;;  %v3972_v9 = vcombine.low %v171_v62, %v175_v63 }
 0x12f   :  { %v3962_v0 = vcombine.low %v162_v50, %v166_v51 }
 0x130   :  { %2841 = vmatpush1.bf16.msra.mxu0 %v3898_v58  ;;  %3005 = vmatpush1.bf16.msra.mxu1 %v3900_v59  ;;  %v3963_v58 = vcombine.high %v162_v50, %v166_v51  ;;  %v3965_v59 = vcombine.high %v163_v52, %v167_v54  ;;  %v219_v50 = vld [vmem:[#allocation5 + $0x418] sm:$0xff]  ;;  %v4012_v54 = vcombine.low %v211_v42, %v215_v43 }
 0x131   :  { %2842 = vmatprep.subr.bf16.mxu0 %v3907_v60  ;;  %3006 = vmatprep.subr.bf16.mxu1 %v3909_v61  ;;  %v170_v60 = vld [vmem:[#allocation5 + $0x290] sm:$0xff]  ;;  %v223_v51 = vld [vmem:[#allocation5 + $0x438] sm:$0xff] }
 0x132   :  { %v174_v61 = vld [vmem:[#allocation5 + $0x2b0] sm:$0xff] }
 0x133   :  { %v3970_v8 = vcombine.low %v170_v60, %v174_v61 }
 0x134   :  { %2843 = vmatpush1.bf16.msra.mxu0 %v3906_v2  ;;  %3007 = vmatpush1.bf16.msra.mxu1 %v3908_v3  ;;  %v3971_v2 = vcombine.high %v170_v60, %v174_v61  ;;  %v3973_v3 = vcombine.high %v171_v62, %v175_v63  ;;  %v227_v60 = vld [vmem:[#allocation5 + $0x458] sm:$0xff]  ;;  %v4020_v63 = vcombine.low %v219_v50, %v223_v51 }
 0x135   :  { %2844 = vmatprep.subr.bf16.mxu0 %v3915_v4  ;;  %3008 = vmatprep.subr.bf16.mxu1 %v3917_v5  ;;  %v178_v4 = vld [vmem:[#allocation5 + $0x2d0] sm:$0xff]  ;;  %v231_v61 = vld [vmem:[#allocation5 + $0x478] sm:$0xff] }
 0x136   :  { %v182_v5 = vld [vmem:[#allocation5 + $0x2f0] sm:$0xff] }
 0x137   :  { %v3978_v17 = vcombine.low %v178_v4, %v182_v5 }
 0x138   :  { %2845 = vmatpush1.bf16.msra.mxu0 %v3914_v10  ;;  %3009 = vmatpush1.bf16.msra.mxu1 %v3916_v11  ;;  %v3979_v10 = vcombine.high %v178_v4, %v182_v5  ;;  %v3981_v11 = vcombine.high %v179_v6, %v183_v7  ;;  %v235_v4 = vld [vmem:[#allocation5 + $0x498] sm:$0xff]  ;;  %v4028_v7 = vcombine.low %v227_v60, %v231_v61 }
 0x139   :  { %2846 = vmatprep.subr.bf16.mxu0 %v3923_v13  ;;  %3010 = vmatprep.subr.bf16.mxu1 %v3925_v57  ;;  %v186_v13 = vld [vmem:[#allocation5 + $0x310] sm:$0xff]  ;;  %v239_v5 = vld [vmem:[#allocation5 + $0x4b8] sm:$0xff] }
 0x13a   :  { %v190_v57 = vld [vmem:[#allocation5 + $0x330] sm:$0xff] }
 0x13b   :  { %v3986_v27 = vcombine.low %v186_v13, %v190_v57 }
 0x13c   :  { %2847 = vmatpush1.bf16.msra.mxu0 %v3922_v19  ;;  %3011 = vmatpush1.bf16.msra.mxu1 %v3924_v20  ;;  %v3987_v19 = vcombine.high %v186_v13, %v190_v57  ;;  %v3989_v20 = vcombine.high %v187_v14, %v191_v16  ;;  %v243_v13 = vld [vmem:[#allocation5 + $0x4d8] sm:$0xff] }
 0x13d   :  { %2848 = vmatprep.subr.bf16.mxu0 %v3931_v21  ;;  %3012 = vmatprep.subr.bf16.mxu1 %v3933_v53  ;;  %v194_v21 = vld [vmem:[#allocation5 + $0x350] sm:$0xff]  ;;  %v247_v57 = vld [vmem:[#allocation5 + $0x4f8] sm:$0xff] }
 0x13e   :  { %v198_v53 = vld [vmem:[#allocation5 + $0x370] sm:$0xff] }
 0x13f   :  { %v3994_v36 = vcombine.low %v194_v21, %v198_v53 }
 0x140   :  { %2849 = vmatpush1.bf16.msra.mxu0 %v3930_v29  ;;  %3013 = vmatpush1.bf16.msra.mxu1 %v3932_v30  ;;  %v3995_v29 = vcombine.high %v194_v21, %v198_v53  ;;  %v3997_v30 = vcombine.high %v195_v24, %v199_v26  ;;  %v255_v21 = vld [vmem:[#allocation5 + $0x538] sm:$0xff]  ;;  %v4044_v24 = vcombine.low %v243_v13, %v247_v57 }
 0x141   :  { %2850 = vmatprep.subr.bf16.mxu0 %v3939_v31  ;;  %3014 = vmatprep.subr.bf16.mxu1 %v3941_v15  ;;  %v202_v31 = vld [vmem:[#allocation5 + $0x390] sm:$0xff] }
 0x142   :  { %v206_v15 = vld [vmem:[#allocation5 + $0x3b0] sm:$0xff] }
 0x143   :  { %v4002_v44 = vcombine.low %v202_v31, %v206_v15 }
 0x144   :  { %2851 = vmatpush1.bf16.msra.mxu0 %v3938_v38  ;;  %3015 = vmatpush1.bf16.msra.mxu1 %v3940_v39  ;;  %v4003_v38 = vcombine.high %v202_v31, %v206_v15  ;;  %v4005_v39 = vcombine.high %v203_v33, %v207_v35 }
 0x145   :  { %2852 = vmatprep.subr.bf16.mxu0 %v3947_v40  ;;  %3016 = vmatprep.subr.bf16.mxu1 %v3949_v41  ;;  %v210_v40 = vld [vmem:[#allocation5 + $0x3d0] sm:$0xff] }
 0x146   :  { %v214_v41 = vld [vmem:[#allocation5 + $0x3f0] sm:$0xff] }
 0x147   :  { %v4010_v52 = vcombine.low %v210_v40, %v214_v41 }
 0x148   :  { %2853 = vmatpush1.bf16.msra.mxu0 %v3946_v46  ;;  %3017 = vmatpush1.bf16.msra.mxu1 %v3948_v47  ;;  %v4011_v46 = vcombine.high %v210_v40, %v214_v41  ;;  %v4013_v47 = vcombine.high %v211_v42, %v215_v43 }
 0x149   :  { %2854 = vmatprep.subr.bf16.mxu0 %v3955_v48  ;;  %3018 = vmatprep.subr.bf16.mxu1 %v3957_v49  ;;  %v218_v48 = vld [vmem:[#allocation5 + $0x410] sm:$0xff] }
 0x14a   :  { %v222_v49 = vld [vmem:[#allocation5 + $0x430] sm:$0xff] }
 0x14b   :  { %v4018_v62 = vcombine.low %v218_v48, %v222_v49 }
 0x14c   :  { %2855 = vmatpush1.bf16.msra.mxu0 %v3954_v55  ;;  %3019 = vmatpush1.bf16.msra.mxu1 %v3956_v56  ;;  %v4019_v55 = vcombine.high %v218_v48, %v222_v49  ;;  %v4021_v56 = vcombine.high %v219_v50, %v223_v51 }
 0x14d   :  { %2856 = vmatprep.subr.bf16.mxu0 %v3963_v58  ;;  %3020 = vmatprep.subr.bf16.mxu1 %v3965_v59  ;;  %v226_v58 = vld [vmem:[#allocation5 + $0x450] sm:$0xff] }
 0x14e   :  { %v230_v59 = vld [vmem:[#allocation5 + $0x470] sm:$0xff] }
 0x14f   :  { %v4026_v6 = vcombine.low %v226_v58, %v230_v59 }
 0x150   :  { %2857 = vmatpush1.bf16.msra.mxu0 %v3962_v0  ;;  %3021 = vmatpush1.bf16.msra.mxu1 %v3964_v1  ;;  %v4027_v0 = vcombine.high %v226_v58, %v230_v59  ;;  %v4029_v1 = vcombine.high %v227_v60, %v231_v61 }
 0x151   :  { %2858 = vmatprep.subr.bf16.mxu0 %v3971_v2  ;;  %3022 = vmatprep.subr.bf16.mxu1 %v3973_v3  ;;  %v234_v2 = vld [vmem:[#allocation5 + $0x490] sm:$0xff] }
 0x152   :  { %v238_v3 = vld [vmem:[#allocation5 + $0x4b0] sm:$0xff] }
 0x153   :  { %v4034_v14 = vcombine.low %v234_v2, %v238_v3 }
 0x154   :  { %2859 = vmatpush1.bf16.msra.mxu0 %v3970_v8  ;;  %3023 = vmatpush1.bf16.msra.mxu1 %v3972_v9  ;;  %v4035_v8 = vcombine.high %v234_v2, %v238_v3  ;;  %v4037_v9 = vcombine.high %v235_v4, %v239_v5 }
 0x155   :  { %2860 = vmatprep.subr.bf16.mxu0 %v3979_v10  ;;  %3024 = vmatprep.subr.bf16.mxu1 %v3981_v11  ;;  %v242_v10 = vld [vmem:[#allocation5 + $0x4d0] sm:$0xff] }
 0x156   :  { %v246_v11 = vld [vmem:[#allocation5 + $0x4f0] sm:$0xff] }
 0x157   :  { %v4043_v16 = vcombine.high %v242_v10, %v246_v11  ;;  %v4042_v53 = vcombine.low %v242_v10, %v246_v11 }
 0x158   :  { %2861 = vmatpush1.bf16.msra.mxu0 %v3978_v17  ;;  %3025 = vmatpush1.bf16.msra.mxu1 %v3980_v18  ;;  %v4045_v17 = vcombine.high %v243_v13, %v247_v57  ;;  %v250_v18 = vld [vmem:[#allocation5 + $0x510] sm:$0xff] }
 0x159   :  { %2862 = vmatprep.subr.bf16.mxu0 %v3987_v19  ;;  %3026 = vmatprep.subr.bf16.mxu1 %v3989_v20  ;;  %v254_v19 = vld [vmem:[#allocation5 + $0x530] sm:$0xff]  ;;  %v251_v20 = vld [vmem:[#allocation5 + $0x518] sm:$0xff] }
 0x15a   :  { %v4051_v26 = vcombine.high %v250_v18, %v254_v19  ;;  %v4050_v31 = vcombine.low %v250_v18, %v254_v19  ;;  %v4052_v15 = vcombine.low %v251_v20, %v255_v21 }
 0x15c   :  { %2863 = vmatpush1.bf16.msra.mxu0 %v3986_v27  ;;  %3027 = vmatpush1.bf16.msra.mxu1 %v3988_v28  ;;  %v258_v27 = vld [vmem:[#allocation5 + $0x550] sm:$0xff] }
 0x15d   :  { %2864 = vmatprep.subr.bf16.mxu0 %v3995_v29  ;;  %3028 = vmatprep.subr.bf16.mxu1 %v3997_v30  ;;  %v262_v28 = vld [vmem:[#allocation5 + $0x570] sm:$0xff]  ;;  %v259_v29 = vld [vmem:[#allocation5 + $0x558] sm:$0xff] }
 0x15e   :  { %v263_v30 = vld [vmem:[#allocation5 + $0x578] sm:$0xff]  ;;  %v4059_v33 = vcombine.high %v258_v27, %v262_v28  ;;  %v4058_v40 = vcombine.low %v258_v27, %v262_v28 }
 0x15f   :  { %v4061_v35 = vcombine.high %v259_v29, %v263_v30  ;;  %v4060_v41 = vcombine.low %v259_v29, %v263_v30 }
 0x160   :  { %2865 = vmatpush1.bf16.msra.mxu0 %v3994_v36  ;;  %3029 = vmatpush1.bf16.msra.mxu1 %v3996_v37  ;;  %v266_v36 = vld [vmem:[#allocation5 + $0x590] sm:$0xff] }
 0x161   :  { %2866 = vmatprep.subr.bf16.mxu0 %v4003_v38  ;;  %3030 = vmatprep.subr.bf16.mxu1 %v4005_v39  ;;  %v270_v37 = vld [vmem:[#allocation5 + $0x5b0] sm:$0xff]  ;;  %v267_v38 = vld [vmem:[#allocation5 + $0x598] sm:$0xff] }
 0x162   :  { %v271_v39 = vld [vmem:[#allocation5 + $0x5b8] sm:$0xff]  ;;  %v4067_v42 = vcombine.high %v266_v36, %v270_v37  ;;  %v4066_v48 = vcombine.low %v266_v36, %v270_v37 }
 0x163   :  { %v4069_v43 = vcombine.high %v267_v38, %v271_v39  ;;  %v4068_v49 = vcombine.low %v267_v38, %v271_v39 }
 0x164   :  { %2867 = vmatpush1.bf16.msra.mxu0 %v4002_v44  ;;  %3031 = vmatpush1.bf16.msra.mxu1 %v4004_v45  ;;  %v274_v44 = vld [vmem:[#allocation5 + $0x5d0] sm:$0xff] }
 0x165   :  { %2868 = vmatprep.subr.bf16.mxu0 %v4011_v46  ;;  %3032 = vmatprep.subr.bf16.mxu1 %v4013_v47  ;;  %v278_v45 = vld [vmem:[#allocation5 + $0x5f0] sm:$0xff]  ;;  %v275_v46 = vld [vmem:[#allocation5 + $0x5d8] sm:$0xff] }
 0x166   :  { %v279_v47 = vld [vmem:[#allocation5 + $0x5f8] sm:$0xff]  ;;  %v4075_v50 = vcombine.high %v274_v44, %v278_v45  ;;  %v4074_v58 = vcombine.low %v274_v44, %v278_v45 }
 0x167   :  { %v4077_v51 = vcombine.high %v275_v46, %v279_v47  ;;  %v4076_v59 = vcombine.low %v275_v46, %v279_v47 }
 0x168   :  { %2869 = vmatpush1.bf16.msra.mxu0 %v4010_v52  ;;  %3033 = vmatpush1.bf16.msra.mxu1 %v4012_v54  ;;  %v282_v52 = vld [vmem:[#allocation5 + $0x610] sm:$0xff] }
 0x169   :  { %2879 = vmatprep.subr.bf16.mxu0 %v4019_v55  ;;  %3043 = vmatprep.subr.bf16.mxu1 %v4021_v56  ;;  %v286_v54 = vld [vmem:[#allocation5 + $0x630] sm:$0xff]  ;;  %v283_v55 = vld [vmem:[#allocation5 + $0x618] sm:$0xff] }
 0x16a   :  { %v287_v56 = vld [vmem:[#allocation5 + $0x638] sm:$0xff]  ;;  %v4083_v60 = vcombine.high %v282_v52, %v286_v54  ;;  %v4082_v2 = vcombine.low %v282_v52, %v286_v54 }
 0x16b   :  { %2871 = vmatmul.mubr.bf16.vlgmr.msra.gmra.mrb[4].mxu0 %v4825_v12  ;;  %3035 = vmatmul.mubr.bf16.vlgmr.msra.gmra.mrb[4].mxu1 %v4825_v12  ;;  %v4036_v12 = vcombine.low %v235_v4, %v239_v5  ;;  %v4085_v61 = vcombine.high %v283_v55, %v287_v56  ;;  %v4084_v3 = vcombine.low %v283_v55, %v287_v56 }
 0x16c   :  { %2880 = vmatpush1.bf16.msra.mxu0 %v4018_v62  ;;  %3044 = vmatpush1.bf16.msra.mxu1 %v4020_v63  ;;  %v290_v62 = vld [vmem:[#allocation5 + $0x650] sm:$0xff] }
 0x16d   :  { %2881 = vmatprep.subr.bf16.mxu0 %v4027_v0  ;;  %3045 = vmatprep.subr.bf16.mxu1 %v4029_v1  ;;  %v294_v63 = vld [vmem:[#allocation5 + $0x670] sm:$0xff]  ;;  %v291_v0 = vld [vmem:[#allocation5 + $0x658] sm:$0xff] }
 0x16e   :  { %2911 = vmatprep.mubr.bf16.mxu0 %v4831_v22  ;;  %3075 = vmatprep.mubr.bf16.mxu1 %v4831_v22  ;;  %v4053_v22 = vcombine.high %v251_v20, %v255_v21  ;;  %v295_v1 = vld [vmem:[#allocation5 + $0x678] sm:$0xff]  ;;  %v4091_v4 = vcombine.high %v290_v62, %v294_v63  ;;  %v4090_v10 = vcombine.low %v290_v62, %v294_v63 }
 0x16f   :  { %v4093_v5 = vcombine.high %v291_v0, %v295_v1  ;;  %v4092_v11 = vcombine.low %v291_v0, %v295_v1 }
 0x170   :  { %2882 = vmatpush1.bf16.msra.mxu0 %v4026_v6  ;;  %3046 = vmatpush1.bf16.msra.mxu1 %v4028_v7  ;;  %v298_v6 = vld [vmem:[#allocation5 + $0x690] sm:$0xff] }
 0x171   :  { %2883 = vmatprep.subr.bf16.mxu0 %v4035_v8  ;;  %3047 = vmatprep.subr.bf16.mxu1 %v4037_v9  ;;  %v302_v7 = vld [vmem:[#allocation5 + $0x6b0] sm:$0xff]  ;;  %v299_v8 = vld [vmem:[#allocation5 + $0x698] sm:$0xff] }
 0x172   :  { %v303_v9 = vld [vmem:[#allocation5 + $0x6b8] sm:$0xff]  ;;  %v4099_v13 = vcombine.high %v298_v6, %v302_v7  ;;  %v4098_v18 = vcombine.low %v298_v6, %v302_v7 }
 0x173   :  { %v4101_v57 = vcombine.high %v299_v8, %v303_v9  ;;  %v4100_v19 = vcombine.low %v299_v8, %v303_v9 }
 0x174   :  { %2884 = vmatpush1.bf16.msra.mxu0 %v4034_v14  ;;  %3048 = vmatpush1.bf16.msra.mxu1 %v4036_v12  ;;  %v306_v14 = vld [vmem:[#allocation5 + $0x6d0] sm:$0xff] }
 0x175   :  { %2885 = vmatprep.subr.bf16.mxu0 %v4043_v16  ;;  %3049 = vmatprep.subr.bf16.mxu1 %v4045_v17  ;;  %v310_v12 = vld [vmem:[#allocation5 + $0x6f0] sm:$0xff]  ;;  %v307_v16 = vld [vmem:[#allocation5 + $0x6d8] sm:$0xff] }
 0x176   :  { %v311_v17 = vld [vmem:[#allocation5 + $0x6f8] sm:$0xff]  ;;  %v4107_v20 = vcombine.high %v306_v14, %v310_v12  ;;  %v4106_v27 = vcombine.low %v306_v14, %v310_v12 }
 0x177   :  { %v4109_v21 = vcombine.high %v307_v16, %v311_v17  ;;  %v4108_v28 = vcombine.low %v307_v16, %v311_v17 }
 0x178   :  { %2886 = vmatpush1.bf16.msra.mxu0 %v4042_v53  ;;  %3050 = vmatpush1.bf16.msra.mxu1 %v4044_v24  ;;  %v314_v53 = vld [vmem:[#allocation5 + $0x710] sm:$0xff] }
 0x179   :  { %2887 = vmatprep.subr.bf16.mxu0 %v4051_v26  ;;  %3051 = vmatprep.subr.bf16.mxu1 %v4053_v22  ;;  %v318_v24 = vld [vmem:[#allocation5 + $0x730] sm:$0xff]  ;;  %v315_v26 = vld [vmem:[#allocation5 + $0x718] sm:$0xff] }
 0x17a   :  { %v319_v22 = vld [vmem:[#allocation5 + $0x738] sm:$0xff]  ;;  %v4115_v29 = vcombine.high %v314_v53, %v318_v24  ;;  %v4114_v36 = vcombine.low %v314_v53, %v318_v24 }
 0x17b   :  { %v4117_v30 = vcombine.high %v315_v26, %v319_v22  ;;  %v4116_v37 = vcombine.low %v315_v26, %v319_v22  ;;  %v378_v22 = vld [vmem:[#allocation5 + $0x910] sm:$0xff] }
 0x17c   :  { %2888 = vmatpush1.bf16.msra.mxu0 %v4050_v31  ;;  %3052 = vmatpush1.bf16.msra.mxu1 %v4052_v15  ;;  %v322_v31 = vld [vmem:[#allocation5 + $0x750] sm:$0xff] }
 0x17d   :  { %2889 = vmatprep.subr.bf16.mxu0 %v4059_v33  ;;  %3053 = vmatprep.subr.bf16.mxu1 %v4061_v35  ;;  %v326_v15 = vld [vmem:[#allocation5 + $0x770] sm:$0xff]  ;;  %v323_v33 = vld [vmem:[#allocation5 + $0x758] sm:$0xff] }
 0x17e   :  { %v327_v35 = vld [vmem:[#allocation5 + $0x778] sm:$0xff]  ;;  %v4123_v38 = vcombine.high %v322_v31, %v326_v15  ;;  %v4122_v44 = vcombine.low %v322_v31, %v326_v15 }
 0x17f   :  { %v4125_v39 = vcombine.high %v323_v33, %v327_v35  ;;  %v4124_v45 = vcombine.low %v323_v33, %v327_v35  ;;  %v386_v33 = vld [vmem:[#allocation5 + $0x950] sm:$0xff] }
 0x180   :  { %2890 = vmatpush1.bf16.msra.mxu0 %v4058_v40  ;;  %3054 = vmatpush1.bf16.msra.mxu1 %v4060_v41  ;;  %v330_v40 = vld [vmem:[#allocation5 + $0x790] sm:$0xff] }
 0x181   :  { %2891 = vmatprep.subr.bf16.mxu0 %v4067_v42  ;;  %3055 = vmatprep.subr.bf16.mxu1 %v4069_v43  ;;  %v334_v41 = vld [vmem:[#allocation5 + $0x7b0] sm:$0xff]  ;;  %v331_v42 = vld [vmem:[#allocation5 + $0x798] sm:$0xff] }
 0x182   :  { %v335_v43 = vld [vmem:[#allocation5 + $0x7b8] sm:$0xff]  ;;  %v4131_v46 = vcombine.high %v330_v40, %v334_v41  ;;  %v4130_v52 = vcombine.low %v330_v40, %v334_v41  ;;  %v390_v35 = vld [vmem:[#allocation5 + $0x970] sm:$0xff] }
 0x183   :  { %v4133_v47 = vcombine.high %v331_v42, %v335_v43  ;;  %v4132_v54 = vcombine.low %v331_v42, %v335_v43  ;;  %v4187_v40 = vcombine.high %v386_v33, %v390_v35  ;;  %v394_v42 = vld [vmem:[#allocation5 + $0x990] sm:$0xff] }
 0x184   :  { %2892 = vmatpush1.bf16.msra.mxu0 %v4066_v48  ;;  %3056 = vmatpush1.bf16.msra.mxu1 %v4068_v49  ;;  %v338_v48 = vld [vmem:[#allocation5 + $0x7d0] sm:$0xff] }
 0x185   :  { %2893 = vmatprep.subr.bf16.mxu0 %v4075_v50  ;;  %3057 = vmatprep.subr.bf16.mxu1 %v4077_v51  ;;  %v342_v49 = vld [vmem:[#allocation5 + $0x7f0] sm:$0xff]  ;;  %v339_v50 = vld [vmem:[#allocation5 + $0x7d8] sm:$0xff] }
 0x186   :  { %v343_v51 = vld [vmem:[#allocation5 + $0x7f8] sm:$0xff]  ;;  %v4139_v55 = vcombine.high %v338_v48, %v342_v49  ;;  %v4138_v62 = vcombine.low %v338_v48, %v342_v49  ;;  %v398_v43 = vld [vmem:[#allocation5 + $0x9b0] sm:$0xff] }
 0x187   :  { %v4141_v56 = vcombine.high %v339_v50, %v343_v51  ;;  %v4140_v63 = vcombine.low %v339_v50, %v343_v51  ;;  %v4195_v48 = vcombine.high %v394_v42, %v398_v43  ;;  %v402_v50 = vld [vmem:[#allocation5 + $0x9d0] sm:$0xff] }
 0x188   :  { %2894 = vmatpush1.bf16.msra.mxu0 %v4074_v58  ;;  %3058 = vmatpush1.bf16.msra.mxu1 %v4076_v59  ;;  %v346_v58 = vld [vmem:[#allocation5 + $0x810] sm:$0xff] }
 0x189   :  { %2895 = vmatprep.subr.bf16.mxu0 %v4083_v60  ;;  %3059 = vmatprep.subr.bf16.mxu1 %v4085_v61  ;;  %v350_v59 = vld [vmem:[#allocation5 + $0x830] sm:$0xff]  ;;  %v347_v60 = vld [vmem:[#allocation5 + $0x818] sm:$0xff] }
 0x18a   :  { %v351_v61 = vld [vmem:[#allocation5 + $0x838] sm:$0xff]  ;;  %v4147_v0 = vcombine.high %v346_v58, %v350_v59  ;;  %v4146_v6 = vcombine.low %v346_v58, %v350_v59  ;;  %v406_v51 = vld [vmem:[#allocation5 + $0x9f0] sm:$0xff] }
 0x18b   :  { %v4149_v1 = vcombine.high %v347_v60, %v351_v61  ;;  %v4148_v7 = vcombine.low %v347_v60, %v351_v61  ;;  %v4203_v58 = vcombine.high %v402_v50, %v406_v51  ;;  %v410_v60 = vld [vmem:[#allocation5 + $0xa10] sm:$0xff] }
 0x18c   :  { %2896 = vmatpush1.bf16.msra.mxu0 %v4082_v2  ;;  %3060 = vmatpush1.bf16.msra.mxu1 %v4084_v3  ;;  %v354_v2 = vld [vmem:[#allocation5 + $0x850] sm:$0xff] }
 0x18d   :  { %2897 = vmatprep.subr.bf16.mxu0 %v4091_v4  ;;  %3061 = vmatprep.subr.bf16.mxu1 %v4093_v5  ;;  %v358_v3 = vld [vmem:[#allocation5 + $0x870] sm:$0xff]  ;;  %v355_v4 = vld [vmem:[#allocation5 + $0x858] sm:$0xff] }
 0x18e   :  { %v359_v5 = vld [vmem:[#allocation5 + $0x878] sm:$0xff]  ;;  %v4155_v8 = vcombine.high %v354_v2, %v358_v3  ;;  %v4154_v14 = vcombine.low %v354_v2, %v358_v3  ;;  %v414_v61 = vld [vmem:[#allocation5 + $0xa30] sm:$0xff] }
 0x18f   :  { %v4157_v9 = vcombine.high %v355_v4, %v359_v5  ;;  %v4156_v12 = vcombine.low %v355_v4, %v359_v5  ;;  %v4211_v2 = vcombine.high %v410_v60, %v414_v61  ;;  %v418_v4 = vld [vmem:[#allocation5 + $0xa50] sm:$0xff] }
 0x190   :  { %2898 = vmatpush1.bf16.msra.mxu0 %v4090_v10  ;;  %3062 = vmatpush1.bf16.msra.mxu1 %v4092_v11  ;;  %v362_v10 = vld [vmem:[#allocation5 + $0x890] sm:$0xff] }
 0x191   :  { %2899 = vmatprep.subr.bf16.mxu0 %v4099_v13  ;;  %3063 = vmatprep.subr.bf16.mxu1 %v4101_v57  ;;  %v366_v11 = vld [vmem:[#allocation5 + $0x8b0] sm:$0xff]  ;;  %v363_v13 = vld [vmem:[#allocation5 + $0x898] sm:$0xff] }
 0x192   :  { %v367_v57 = vld [vmem:[#allocation5 + $0x8b8] sm:$0xff]  ;;  %v4163_v16 = vcombine.high %v362_v10, %v366_v11  ;;  %v4162_v53 = vcombine.low %v362_v10, %v366_v11  ;;  %v422_v5 = vld [vmem:[#allocation5 + $0xa70] sm:$0xff] }
 0x193   :  { %v4165_v17 = vcombine.high %v363_v13, %v367_v57  ;;  %v4219_v10 = vcombine.high %v418_v4, %v422_v5 }
 0x194   :  { %2900 = vmatpush1.bf16.msra.mxu0 %v4098_v18  ;;  %3064 = vmatpush1.bf16.msra.mxu1 %v4100_v19  ;;  %v370_v18 = vld [vmem:[#allocation5 + $0x8d0] sm:$0xff] }
 0x195   :  { %2901 = vmatprep.subr.bf16.mxu0 %v4107_v20  ;;  %3065 = vmatprep.subr.bf16.mxu1 %v4109_v21  ;;  %v374_v19 = vld [vmem:[#allocation5 + $0x8f0] sm:$0xff]  ;;  %v371_v20 = vld [vmem:[#allocation5 + $0x8d8] sm:$0xff] }
 0x196   :  { %v375_v21 = vld [vmem:[#allocation5 + $0x8f8] sm:$0xff]  ;;  %v4171_v24 = vcombine.high %v370_v18, %v374_v19 }
 0x197   :  { %v4173_v26 = vcombine.high %v371_v20, %v375_v21  ;;  %v4172_v31 = vcombine.low %v371_v20, %v375_v21  ;;  %v434_v20 = vld [vmem:[#allocation5 + $0xad0] sm:$0xff] }
 0x198   :  { %2902 = vmatpush1.bf16.msra.mxu0 %v4106_v27  ;;  %3066 = vmatpush1.bf16.msra.mxu1 %v4108_v28  ;;  %v382_v27 = vld [vmem:[#allocation5 + $0x930] sm:$0xff]  ;;  %v379_v28 = vld [vmem:[#allocation5 + $0x918] sm:$0xff] }
 0x199   :  { %2903 = vmatprep.subr.bf16.mxu0 %v4115_v29  ;;  %3067 = vmatprep.subr.bf16.mxu1 %v4117_v30  ;;  %v383_v29 = vld [vmem:[#allocation5 + $0x938] sm:$0xff]  ;;  %v4170_v30 = vcombine.low %v370_v18, %v374_v19  ;;  %v4179_v15 = vcombine.high %v378_v22, %v382_v27  ;;  %v438_v21 = vld [vmem:[#allocation5 + $0xaf0] sm:$0xff] }
 0x19c   :  { %2904 = vmatpush1.bf16.msra.mxu0 %v4114_v36  ;;  %3068 = vmatpush1.bf16.msra.mxu1 %v4116_v37  ;;  %v387_v36 = vld [vmem:[#allocation5 + $0x958] sm:$0xff] }
 0x19d   :  { %2905 = vmatprep.subr.bf16.mxu0 %v4123_v38  ;;  %3069 = vmatprep.subr.bf16.mxu1 %v4125_v39  ;;  %v391_v37 = vld [vmem:[#allocation5 + $0x978] sm:$0xff]  ;;  %v4178_v38 = vcombine.low %v378_v22, %v382_v27  ;;  %v4180_v39 = vcombine.low %v379_v28, %v383_v29  ;;  %v4235_v22 = vcombine.high %v434_v20, %v438_v21 }
 0x19e   :  { %v4189_v41 = vcombine.high %v387_v36, %v391_v37 }
 0x1a0   :  { %2906 = vmatpush1.bf16.msra.mxu0 %v4122_v44  ;;  %3070 = vmatpush1.bf16.msra.mxu1 %v4124_v45  ;;  %v395_v44 = vld [vmem:[#allocation5 + $0x998] sm:$0xff] }
 0x1a1   :  { %2907 = vmatprep.subr.bf16.mxu0 %v4131_v46  ;;  %3071 = vmatprep.subr.bf16.mxu1 %v4133_v47  ;;  %v399_v45 = vld [vmem:[#allocation5 + $0x9b8] sm:$0xff]  ;;  %v4186_v46 = vcombine.low %v386_v33, %v390_v35  ;;  %v4188_v47 = vcombine.low %v387_v36, %v391_v37  ;;  %v450_v36 = vld [vmem:[#allocation5 + $0xb50] sm:$0xff] }
 0x1a2   :  { %v4197_v49 = vcombine.high %v395_v44, %v399_v45  ;;  %v454_v37 = vld [vmem:[#allocation5 + $0xb70] sm:$0xff] }
 0x1a4   :  { %2908 = vmatpush1.bf16.msra.mxu0 %v4130_v52  ;;  %3072 = vmatpush1.bf16.msra.mxu1 %v4132_v54  ;;  %v403_v52 = vld [vmem:[#allocation5 + $0x9d8] sm:$0xff] }
 0x1a5   :  { %2909 = vmatprep.subr.bf16.mxu0 %v4139_v55  ;;  %3073 = vmatprep.subr.bf16.mxu1 %v4141_v56  ;;  %v407_v54 = vld [vmem:[#allocation5 + $0x9f8] sm:$0xff]  ;;  %v4194_v55 = vcombine.low %v394_v42, %v398_v43  ;;  %v4196_v56 = vcombine.low %v395_v44, %v399_v45  ;;  %v4251_v42 = vcombine.high %v450_v36, %v454_v37  ;;  %v458_v44 = vld [vmem:[#allocation5 + $0xb90] sm:$0xff] }
 0x1a6   :  { %v4205_v59 = vcombine.high %v403_v52, %v407_v54  ;;  %v462_v45 = vld [vmem:[#allocation5 + $0xbb0] sm:$0xff] }
 0x1a8   :  { %2910 = vmatpush1.bf16.msra.mxu0 %v4138_v62  ;;  %3074 = vmatpush1.bf16.msra.mxu1 %v4140_v63  ;;  %v411_v62 = vld [vmem:[#allocation5 + $0xa18] sm:$0xff] }
 0x1a9   :  { %2920 = vmatprep.subr.bf16.mxu0 %v4147_v0  ;;  %3084 = vmatprep.subr.bf16.mxu1 %v4149_v1  ;;  %v415_v63 = vld [vmem:[#allocation5 + $0xa38] sm:$0xff]  ;;  %v4202_v0 = vcombine.low %v402_v50, %v406_v51  ;;  %v4204_v1 = vcombine.low %v403_v52, %v407_v54  ;;  %v4259_v50 = vcombine.high %v458_v44, %v462_v45  ;;  %v466_v52 = vld [vmem:[#allocation5 + $0xbd0] sm:$0xff] }
 0x1aa   :  { %v4213_v3 = vcombine.high %v411_v62, %v415_v63  ;;  %v470_v54 = vld [vmem:[#allocation5 + $0xbf0] sm:$0xff] }
 0x1ab   :  { %2912 = vmatmul.mubr.bf16.vlgmr.msra.gmra.mrb[4].mxu0 %v4839_v23  ;;  %3076 = vmatmul.mubr.bf16.vlgmr.msra.gmra.mrb[4].mxu1 %v4839_v23  ;;  %v4164_v23 = vcombine.low %v363_v13, %v367_v57  ;;  %v426_v13 = vld [vmem:[#allocation5 + $0xa90] sm:$0xff] }
 0x1ac   :  { %2921 = vmatpush1.bf16.msra.mxu0 %v4146_v6  ;;  %3085 = vmatpush1.bf16.msra.mxu1 %v4148_v7  ;;  %v419_v6 = vld [vmem:[#allocation5 + $0xa58] sm:$0xff]  ;;  %v430_v57 = vld [vmem:[#allocation5 + $0xab0] sm:$0xff] }
 0x1ad   :  { %2922 = vmatprep.subr.bf16.mxu0 %v4155_v8  ;;  %3086 = vmatprep.subr.bf16.mxu1 %v4157_v9  ;;  %v423_v7 = vld [vmem:[#allocation5 + $0xa78] sm:$0xff]  ;;  %v4210_v8 = vcombine.low %v410_v60, %v414_v61  ;;  %v4212_v9 = vcombine.low %v411_v62, %v415_v63  ;;  %v4227_v18 = vcombine.high %v426_v13, %v430_v57  ;;  %v474_v62 = vld [vmem:[#allocation5 + $0xc10] sm:$0xff] }
 0x1ae   :  { %2952 = vmatprep.mubr.bf16.mxu0 %v4845_v32  ;;  %3116 = vmatprep.mubr.bf16.mxu1 %v4845_v32  ;;  %v4181_v32 = vcombine.high %v379_v28, %v383_v29  ;;  %v4221_v11 = vcombine.high %v419_v6, %v423_v7  ;;  %v442_v28 = vld [vmem:[#allocation5 + $0xb10] sm:$0xff]  ;;  %v4267_v60 = vcombine.high %v466_v52, %v470_v54 }
 0x1af   :  { %v446_v29 = vld [vmem:[#allocation5 + $0xb30] sm:$0xff] }
 0x1b0   :  { %2923 = vmatpush1.bf16.msra.mxu0 %v4154_v14  ;;  %3087 = vmatpush1.bf16.msra.mxu1 %v4156_v12  ;;  %v427_v14 = vld [vmem:[#allocation5 + $0xa98] sm:$0xff]  ;;  %v4243_v33 = vcombine.high %v442_v28, %v446_v29  ;;  %v478_v63 = vld [vmem:[#allocation5 + $0xc30] sm:$0xff] }
 0x1b1   :  { %2924 = vmatprep.subr.bf16.mxu0 %v4163_v16  ;;  %3088 = vmatprep.subr.bf16.mxu1 %v4165_v17  ;;  %v431_v12 = vld [vmem:[#allocation5 + $0xab8] sm:$0xff]  ;;  %v4218_v16 = vcombine.low %v418_v4, %v422_v5  ;;  %v4220_v17 = vcombine.low %v419_v6, %v423_v7  ;;  %v4275_v4 = vcombine.high %v474_v62, %v478_v63 }
 0x1b2   :  { %v4229_v19 = vcombine.high %v427_v14, %v431_v12  ;;  %v4274_v6 = vcombine.low %v474_v62, %v478_v63  ;;  %v4536_v62 = vld [vmem:[#allocation8 + $0xb0] sm:$0xff]   ;;  %v4537_v63 = vld [vmem:[#allocation8 + $0x78] sm:$0xff]  }
 0x1b4   :  { %2925 = vmatpush1.bf16.msra.mxu0 %v4162_v53  ;;  %3089 = vmatpush1.bf16.msra.mxu1 %v4164_v23  ;;  %v435_v53 = vld [vmem:[#allocation5 + $0xad8] sm:$0xff] }
 0x1b5   :  { %2926 = vmatprep.subr.bf16.mxu0 %v4171_v24  ;;  %3090 = vmatprep.subr.bf16.mxu1 %v4173_v26  ;;  %v439_v23 = vld [vmem:[#allocation5 + $0xaf8] sm:$0xff]  ;;  %v4226_v24 = vcombine.low %v426_v13, %v430_v57  ;;  %v4228_v26 = vcombine.low %v427_v14, %v431_v12  ;;  %v4512_v57 = vld [vmem:[#allocation8 + $0x80] sm:$0xff]   ;;  %v4513_v14 = vld [vmem:[#allocation8 + $0x48] sm:$0xff]  }
 0x1b6   :  { %v4237_v27 = vcombine.high %v435_v53, %v439_v23  ;;  %v4514_v12 = vld [vmem:[#allocation8 + $0xc8] sm:$0xff]  }
 0x1b8   :  { %2927 = vmatpush1.bf16.msra.mxu0 %v4170_v30  ;;  %3091 = vmatpush1.bf16.msra.mxu1 %v4172_v31  ;;  %v443_v30 = vld [vmem:[#allocation5 + $0xb18] sm:$0xff] }
 0x1b9   :  { %2928 = vmatprep.subr.bf16.mxu0 %v4179_v15  ;;  %3092 = vmatprep.subr.bf16.mxu1 %v4181_v32  ;;  %v447_v31 = vld [vmem:[#allocation5 + $0xb38] sm:$0xff]  ;;  %v4234_v15 = vcombine.low %v434_v20, %v438_v21  ;;  %v4236_v32 = vcombine.low %v435_v53, %v439_v23 }
 0x1ba   :  { %v4245_v35 = vcombine.high %v443_v30, %v447_v31  ;;  %v4518_v21 = vld [vmem:[#allocation8 + $0xd0] sm:$0xff]  }
 0x1bb   :  { %v4519_v53 = vld [vmem:[#allocation8 + $0x10] sm:$0xff]  }
 0x1bc   :  { %2929 = vmatpush1.bf16.msra.mxu0 %v4178_v38  ;;  %3093 = vmatpush1.bf16.msra.mxu1 %v4180_v39  ;;  %v451_v38 = vld [vmem:[#allocation5 + $0xb58] sm:$0xff] }
 0x1bd   :  { %2930 = vmatprep.subr.bf16.mxu0 %v4187_v40  ;;  %3094 = vmatprep.subr.bf16.mxu1 %v4189_v41  ;;  %v455_v39 = vld [vmem:[#allocation5 + $0xb78] sm:$0xff]  ;;  %v4242_v40 = vcombine.low %v442_v28, %v446_v29  ;;  %v4244_v41 = vcombine.low %v443_v30, %v447_v31  ;;  %v4522_v28 = vld [vmem:[#allocation8 + $0xd8] sm:$0xff]  }
 0x1be   :  { %v4253_v43 = vcombine.high %v451_v38, %v455_v39 }
 0x1c0   :  { %2931 = vmatpush1.bf16.msra.mxu0 %v4186_v46  ;;  %3095 = vmatpush1.bf16.msra.mxu1 %v4188_v47  ;;  %v459_v46 = vld [vmem:[#allocation5 + $0xb98] sm:$0xff] }
 0x1c1   :  { %2932 = vmatprep.subr.bf16.mxu0 %v4195_v48  ;;  %3096 = vmatprep.subr.bf16.mxu1 %v4197_v49  ;;  %v463_v47 = vld [vmem:[#allocation5 + $0xbb8] sm:$0xff]  ;;  %v4250_v48 = vcombine.low %v450_v36, %v454_v37  ;;  %v4252_v49 = vcombine.low %v451_v38, %v455_v39  ;;  %v4524_v38 = vld [vmem:[#allocation8 + $0x98] sm:$0xff]   ;;  %v4525_v39 = vld [vmem:[#allocation8 + $0x60] sm:$0xff]  }
 0x1c2   :  { %v4261_v51 = vcombine.high %v459_v46, %v463_v47 }
 0x1c4   :  { %2933 = vmatpush1.bf16.msra.mxu0 %v4194_v55  ;;  %3097 = vmatpush1.bf16.msra.mxu1 %v4196_v56  ;;  %v467_v55 = vld [vmem:[#allocation5 + $0xbd8] sm:$0xff] }
 0x1c5   :  { %2934 = vmatprep.subr.bf16.mxu0 %v4203_v58  ;;  %3098 = vmatprep.subr.bf16.mxu1 %v4205_v59  ;;  %v471_v56 = vld [vmem:[#allocation5 + $0xbf8] sm:$0xff]  ;;  %v4258_v58 = vcombine.low %v458_v44, %v462_v45  ;;  %v4260_v59 = vcombine.low %v459_v46, %v463_v47  ;;  %v4527_v45 = vld [vmem:[#allocation8 + $0x20] sm:$0xff]  }
 0x1c6   :  { %v4269_v61 = vcombine.high %v467_v55, %v471_v56 }
 0x1c8   :  { %2935 = vmatpush1.bf16.msra.mxu0 %v4202_v0  ;;  %3099 = vmatpush1.bf16.msra.mxu1 %v4204_v1  ;;  %v475_v0 = vld [vmem:[#allocation5 + $0xc18] sm:$0xff] }
 0x1c9   :  { %2936 = vmatprep.subr.bf16.mxu0 %v4211_v2  ;;  %3100 = vmatprep.subr.bf16.mxu1 %v4213_v3  ;;  %v479_v1 = vld [vmem:[#allocation5 + $0xc38] sm:$0xff]  ;;  %v4266_v2 = vcombine.low %v466_v52, %v470_v54  ;;  %v4268_v3 = vcombine.low %v467_v55, %v471_v56  ;;  %v4531_v52 = vld [vmem:[#allocation8 + $0x28] sm:$0xff]  }
 0x1ca   :  { %v4277_v5 = vcombine.high %v475_v0, %v479_v1  ;;  %v4276_v7 = vcombine.low %v475_v0, %v479_v1  ;;  %v4532_v55 = vld [vmem:[#allocation8 + $0xa8] sm:$0xff]   ;;  %v4533_v56 = vld [vmem:[#allocation8 + $0x70] sm:$0xff]   ;;  %v4538_v1 = vld [vmem:[#allocation8 + $0xf8] sm:$0xff]  }
 0x1cc   :  { %2937 = vmatpush1.bf16.msra.mxu0 %v4210_v8  ;;  %3101 = vmatpush1.bf16.msra.mxu1 %v4212_v9  ;;  %v4509_v8 = vld [vmem:[#allocation8 + $0x40] sm:$0xff]  }
 0x1cd   :  { %2938 = vmatprep.subr.bf16.mxu0 %v4219_v10  ;;  %3102 = vmatprep.subr.bf16.mxu1 %v4221_v11  ;;  %v4510_v9 = vld [vmem:[#allocation8 + $0xc0] sm:$0xff]   ;;  %v482_v10 = vlaneseq }
 0x1ce   :  { %v4511_v11 = vld [vmem:[#allocation8] sm:$0xff]  }
 0x1cf   :  { %v4875_v13 = vshrl.u32 %v482_v10, 7  ;;  %v4544_v10 = vld [vmem:[#allocation8 + $0x180] sm:$0xff]  }
 0x1d0   :  { %2939 = vmatpush1.bf16.msra.mxu0 %v4218_v16  ;;  %3103 = vmatpush1.bf16.msra.mxu1 %v4220_v17  ;;  %v4573_v16 = vld [vmem:[#allocation2 + $0x18] ss:$0 sps:$4 sm:$0xff]  }
 0x1d1   :  { %2940 = vmatprep.subr.bf16.mxu0 %v4227_v18  ;;  %3104 = vmatprep.subr.bf16.mxu1 %v4229_v19  ;;  %v488_v17 = vsub.s32 1, %v4875_v13  ;;  %v4517_v18 = vld [vmem:[#allocation8 + $0x50] sm:$0xff]   ;;  %v4880_v19 = vld [vmem:[#allocation7] sm:$0xff]  ;;  %v496_v20 = vsub.s32 3, %v4875_v13  ;;  %v484_v46 = vsub.s32 0, %v4875_v13 }
 0x1d3   :  { %v489_v23 = vrot.slane %v4880_v19, %v488_v17  ;;  %v485_v54 = vrot.slane %v4880_v19, %v484_v46  ;;  %v4550_v17 = vld [vmem:[#allocation8 + $0x1d0] sm:$0xff]  }
 0x1d4   :  { %2941 = vmatpush1.bf16.msra.mxu0 %v4226_v24  ;;  %3105 = vmatpush1.bf16.msra.mxu1 %v4228_v26  ;;  %v4520_v24 = vld [vmem:[#allocation8 + $0x90] sm:$0xff]   ;;  %v497_v26 = vrot.slane %v4880_v19, %v496_v20  ;;  %v4553_v20 = vld [vmem:[#allocation8 + $0x158] sm:$0xff]  }
 0x1d5   :  { %2942 = vmatprep.subr.bf16.mxu0 %v4235_v22  ;;  %3106 = vmatprep.subr.bf16.mxu1 %v4237_v27  ;;  %v4521_v22 = vld [vmem:[#allocation8 + $0x58] sm:$0xff]  }
 0x1d8   :  { %2943 = vmatpush1.bf16.msra.mxu0 %v4234_v15  ;;  %3107 = vmatpush1.bf16.msra.mxu1 %v4236_v32 }
 0x1d9   :  { %2944 = vmatprep.subr.bf16.mxu0 %v4243_v33  ;;  %3108 = vmatprep.subr.bf16.mxu1 %v4245_v35  ;;  %v4523_v33 = vld [vmem:[#allocation8 + $0x18] sm:$0xff]  }
 0x1dc   :  { %2945 = vmatpush1.bf16.msra.mxu0 %v4242_v40  ;;  %3109 = vmatpush1.bf16.msra.mxu1 %v4244_v41 }
 0x1dd   :  { %2946 = vmatprep.subr.bf16.mxu0 %v4251_v42  ;;  %3110 = vmatprep.subr.bf16.mxu1 %v4253_v43  ;;  %v4526_v42 = vld [vmem:[#allocation8 + $0xe0] sm:$0xff]  }
 0x1e0   :  { %2947 = vmatpush1.bf16.msra.mxu0 %v4250_v48  ;;  %3111 = vmatpush1.bf16.msra.mxu1 %v4252_v49  ;;  %v4528_v48 = vld [vmem:[#allocation8 + $0xa0] sm:$0xff]   ;;  %v4529_v49 = vld [vmem:[#allocation8 + $0x68] sm:$0xff]  }
 0x1e1   :  { %2948 = vmatprep.subr.bf16.mxu0 %v4259_v50  ;;  %3112 = vmatprep.subr.bf16.mxu1 %v4261_v51  ;;  %v492_v50 = vsub.s32 2, %v4875_v13  ;;  %v4530_v51 = vld [vmem:[#allocation8 + $0xe8] sm:$0xff]  }
 0x1e4   :  { %2949 = vmatpush1.bf16.msra.mxu0 %v4258_v58  ;;  %3113 = vmatpush1.bf16.msra.mxu1 %v4260_v59  ;;  %v493_v58 = vrot.slane %v4880_v19, %v492_v50  ;;  %v4534_v59 = vld [vmem:[#allocation8 + $0xf0] sm:$0xff]  }
 0x1e5   :  { %2950 = vmatprep.subr.bf16.mxu0 %v4267_v60  ;;  %3114 = vmatprep.subr.bf16.mxu1 %v4269_v61  ;;  %v4535_v60 = vld [vmem:[#allocation8 + $0x30] sm:$0xff]  }
 0x1e8   :  { %2951 = vmatpush1.bf16.msra.mxu0 %v4266_v2  ;;  %3115 = vmatpush1.bf16.msra.mxu1 %v4268_v3  ;;  %v4539_v2 = vld [vmem:[#allocation8 + $0x38] sm:$0xff]  }
 0x1e9   :  { %2961 = vmatprep.subr.bf16.mxu0 %v4275_v4  ;;  %3125 = vmatprep.subr.bf16.mxu1 %v4277_v5  ;;  %v4540_v4 = vld [vmem:[#allocation8 + $0xb8] sm:$0xff]   ;;  %v4541_v5 = vld [vmem:[#allocation8 + $0x140] sm:$0xff]  }
 0x1eb   :  { %2953 = vmatmul.mubr.bf16.vlgmr.msra.gmra.mrb[4].mxu0 %v4853_v34  ;;  %3117 = vmatmul.mubr.bf16.vlgmr.msra.gmra.mrb[4].mxu1 %v4853_v34  ;;  %v4515_v34 = vld [vmem:[#allocation8 + $0x8] sm:$0xff]  }
 0x1ec   :  { %2962 = vmatpush1.bf16.msra.mxu0 %v4274_v6  ;;  %3126 = vmatpush1.bf16.msra.mxu1 %v4276_v7  ;;  %v4542_v7 = vld [vmem:[#allocation8 + $0x1c0] sm:$0xff]  }
 0x1ed   :  { %2993 = vmatprep.mubr.bf16.mxu0 %v4723_v25  ;;  %3157 = vmatprep.mubr.bf16.mxu1 %v4723_v25  ;;  %v4516_v25 = vld [vmem:[#allocation8 + $0x88] sm:$0xff]  }
 0x1ee   :  { %4347 = vmatprep.subr.bf16.mxu0 %v4509_v8  ;;  %4369 = vmatprep.subr.bf16.mxu1 %v4510_v9  ;;  %v4543_v8 = vld [vmem:[#allocation8 + $0x100] sm:$0xff]  }
 0x1f7   :  { %4280 = vmatmul.mubr.msk.bf16.vlgmr.msra.gmra.mrb[4].mxu0 %vm2506_vm0, %v4573_v16  ;;  %4281 = vmatmul.mubr.msk.bf16.vlgmr.msra.gmra.mrb[4].mxu1 %vm2506_vm0, %v4573_v16  ;;  %v4548_v16 = vld [vmem:[#allocation8 + $0x188] sm:$0xff]  }
 0x1f8   :  { %4348 = vmatpush3.bf16.msra.mxu0 %v4511_v11  ;;  %4370 = vmatpush3.bf16.msra.mxu1 %v4512_v57  ;;  %v4545_v11 = vld [vmem:[#allocation8 + $0x148] sm:$0xff]  }
 0x1f9   :  { %4349 = vmatprep.subr.bf16.mxu0 %v4513_v14  ;;  %4371 = vmatprep.subr.bf16.mxu1 %v4514_v12  ;;  %v4546_v14 = vld [vmem:[#allocation8 + $0x1c8] sm:$0xff]  }
 0x1fa   :  { %v4547_v12 = vld [vmem:[#allocation8 + $0x108] sm:$0xff]  }
 0x1fc   :  { %4350 = vmatpush3.bf16.msra.mxu0 %v4515_v34  ;;  %4372 = vmatpush3.bf16.msra.mxu1 %v4516_v25  ;;  %v4549_v34 = vld [vmem:[#allocation8 + $0x150] sm:$0xff]  }
 0x1fd   :  { %4351 = vmatprep.subr.bf16.mxu0 %v4517_v18  ;;  %4373 = vmatprep.subr.bf16.mxu1 %v4518_v21  ;;  %v4551_v25 = vld [vmem:[#allocation8 + $0x110] sm:$0xff]   ;;  %v4554_v21 = vld [vmem:[#allocation8 + $0x1d8] sm:$0xff]  }
 0x1fe   :  { %v2667_v27 = vpop.f32.mrb[0].mxu0  ;;  %v2831_v29 = vpop.f32.mrb[0].mxu1  ;;  %v4552_v18 = vld [vmem:[#allocation8 + $0x190] sm:$0xff]  }
 0x1ff   :  { %v2669_v30 = vpop.f32.mrb[1].mxu0  ;;  %v2833_v15 = vpop.f32.mrb[1].mxu1  ;;  %v4435_v61 = vadd.f32 %v2667_v27, %v485_v54  ;;  %v4437_v0 = vadd.f32 %v2831_v29, %v493_v58  ;;  %v4560_v27 = vld [vmem:[#allocation8 + $0x1a0] sm:$0xff]   ;;  %v4562_v29 = vld [vmem:[#allocation8 + $0x1e8] sm:$0xff]  }
 0x200   :  { %4352 = vmatpush3.bf16.msra.mxu0 %v4519_v53  ;;  %v4436_v31 = vadd.f32 %v2669_v30, %v489_v23  ;;  %v2671_v32 = vpop.f32.mrb[2].mxu0  ;;  %4374 = vmatpush3.bf16.msra.mxu1 %v4520_v24  ;;  %v4438_v35 = vadd.f32 %v2833_v15, %v497_v26  ;;  %v2835_v36 = vpop.f32.mrb[2].mxu1  ;;  %v4555_v53 = vld [vmem:[#allocation8 + $0x118] sm:$0xff]   ;;  %v4557_v24 = vld [vmem:[#allocation8 + $0x160] sm:$0xff]   ;;  %v4563_v30 = vld [vmem:[#allocation8 + $0x128] sm:$0xff]  }
 0x201   :  { %v2672_v37 = vpop.f32.mrb[3].mxu0  ;;  %4353 = vmatprep.subr.bf16.mxu0 %v4521_v22  ;;  %v2836_v41 = vpop.f32.mrb[3].mxu1  ;;  %4375 = vmatprep.subr.bf16.mxu1 %v4522_v28  ;;  %v3166_v3 = vmax.f32 %v4435_v61, 0.0  ;;  %v3168_v6 = vmax.f32 %v4437_v0, 0.0  ;;  %v4556_v23 = vld [vmem:[#allocation8 + $0x198] sm:$0xff]   ;;  %v4558_v26 = vld [vmem:[#allocation8 + $0x1e0] sm:$0xff]  }
 0x202   :  { %v3167_v40 = vmax.f32 %v4436_v31, 0.0  ;;  %v3169_v43 = vmax.f32 %v4438_v35, 0.0  ;;  %v4559_v22 = vld [vmem:[#allocation8 + $0x120] sm:$0xff]   ;;  %v4561_v28 = vld [vmem:[#allocation8 + $0x168] sm:$0xff]   ;;  %v4565_v15 = vld [vmem:[#allocation8 + $0x170] sm:$0xff]   ;;  %v508_v41 = vsub.s32 6, %v4875_v13 }
 0x203   :  { %v3174_v9 = vpack.c.bf16 %v3166_v3, %v3166_v3  ;;  %v3176_v57 = vpack.c.bf16 %v3168_v6, %v3168_v6  ;;  %v4564_v31 = vld [vmem:[#allocation8 + $0x1a8] sm:$0xff]   ;;  %v4566_v32 = vld [vmem:[#allocation8 + $0x1f0] sm:$0xff]   ;;  %v4569_v36 = vld [vmem:[#allocation8 + $0x178] sm:$0xff]  }
 0x204   :  { %v3175_v44 = vpack.c.bf16 %v3167_v40, %v3167_v40  ;;  %4354 = vmatpush3.bf16.msra.mxu0 %v4523_v33  ;;  %v3177_v47 = vpack.c.bf16 %v3169_v43, %v3169_v43  ;;  %4376 = vmatpush3.bf16.msra.mxu1 %v4524_v38  ;;  %v4567_v33 = vld [vmem:[#allocation8 + $0x130] sm:$0xff]   ;;  %v4570_v37 = vld [vmem:[#allocation8 + $0x1f8] sm:$0xff]   ;;  %v500_v40 = vsub.s32 4, %v4875_v13  ;;  %v512_v43 = vsub.s32 7, %v4875_v13  ;;  %v4282_v6 = vld [vmem:[#allocation10] ss:$0 sm:$0xff] }
 0x205   :  { %4355 = vmatprep.subr.bf16.mxu0 %v4525_v39  ;;  %4377 = vmatprep.subr.bf16.mxu1 %v4526_v42  ;;  %v4568_v35 = vld [vmem:[#allocation8 + $0x1b0] sm:$0xff]   ;;  %v4571_v38 = vld [vmem:[#allocation8 + $0x138] sm:$0xff]   ;;  %v504_v42 = vsub.s32 5, %v4875_v13 }
 0x206   :  { %3733 = vmatprep.mubr.bf16.mxu0 %v3175_v44  ;;  %3773 = vmatprep.mubr.bf16.mxu1 %v3177_v47  ;;  %v4572_v39 = vld [vmem:[#allocation8 + $0x1b8] sm:$0xff]   ;;  %v501_v44 = vrot.slane %v4880_v19, %v500_v40  ;;  %v513_v47 = vrot.slane %v4880_v19, %v512_v43 }
 0x207   :  { %v505_v46 = vrot.slane %v4880_v19, %v504_v42 }
 0x208   :  { %4356 = vmatpush3.bf16.msra.mxu0 %v4527_v45  ;;  %4378 = vmatpush3.bf16.msra.mxu1 %v4528_v48  ;;  %v509_v45 = vrot.slane %v4880_v19, %v508_v41 }
 0x209   :  { %4357 = vmatprep.subr.bf16.mxu0 %v4529_v49  ;;  %4379 = vmatprep.subr.bf16.mxu1 %v4530_v51 }
 0x20c   :  { %4358 = vmatpush3.bf16.msra.mxu0 %v4531_v52  ;;  %4380 = vmatpush3.bf16.msra.mxu1 %v4532_v55 }
 0x20d   :  { %4359 = vmatprep.subr.bf16.mxu0 %v4533_v56  ;;  %4381 = vmatprep.subr.bf16.mxu1 %v4534_v59 }
 0x210   :  { %4360 = vmatpush3.bf16.msra.mxu0 %v4535_v60  ;;  %4382 = vmatpush3.bf16.msra.mxu1 %v4536_v62 }
 0x211   :  { %4361 = vmatprep.subr.bf16.mxu0 %v4537_v63  ;;  %4383 = vmatprep.subr.bf16.mxu1 %v4538_v1 }
 0x214   :  { %4362 = vmatpush3.bf16.msra.mxu0 %v4539_v2  ;;  %4384 = vmatpush3.bf16.msra.mxu1 %v4540_v4 }
 0x215   :  { %4391 = vmatprep.subr.bf16.mxu0 %v4541_v5  ;;  %4413 = vmatprep.subr.bf16.mxu1 %v4542_v7 }
 0x217   :  { %3734 = vmatmul.mubr.bf16.vlgmr.msra.gmra.mrb[8].mxu0 %v3174_v9  ;;  %3774 = vmatmul.mubr.bf16.vlgmr.msra.gmra.mrb[8].mxu1 %v3176_v57 }
 0x218   :  { %4392 = vmatpush3.bf16.msra.mxu0 %v4543_v8  ;;  %4414 = vmatpush3.bf16.msra.mxu1 %v4544_v10 }
 0x219   :  { %4393 = vmatprep.subr.bf16.mxu0 %v4545_v11  ;;  %4415 = vmatprep.subr.bf16.mxu1 %v4546_v14 }
 0x21c   :  { %4394 = vmatpush3.bf16.msra.mxu0 %v4547_v12  ;;  %4416 = vmatpush3.bf16.msra.mxu1 %v4548_v16 }
 0x21d   :  { %4395 = vmatprep.subr.bf16.mxu0 %v4549_v34  ;;  %4417 = vmatprep.subr.bf16.mxu1 %v4550_v17 }
 0x220   :  { %4396 = vmatpush3.bf16.msra.mxu0 %v4551_v25  ;;  %4418 = vmatpush3.bf16.msra.mxu1 %v4552_v18 }
 0x221   :  { %4397 = vmatprep.subr.bf16.mxu0 %v4553_v20  ;;  %4419 = vmatprep.subr.bf16.mxu1 %v4554_v21 }
 0x224   :  { %4398 = vmatpush3.bf16.msra.mxu0 %v4555_v53  ;;  %4420 = vmatpush3.bf16.msra.mxu1 %v4556_v23 }
 0x225   :  { %4399 = vmatprep.subr.bf16.mxu0 %v4557_v24  ;;  %4421 = vmatprep.subr.bf16.mxu1 %v4558_v26 }
 0x228   :  { %4400 = vmatpush3.bf16.msra.mxu0 %v4559_v22  ;;  %4422 = vmatpush3.bf16.msra.mxu1 %v4560_v27 }
 0x229   :  { %4401 = vmatprep.subr.bf16.mxu0 %v4561_v28  ;;  %4423 = vmatprep.subr.bf16.mxu1 %v4562_v29 }
 0x22c   :  { %4402 = vmatpush3.bf16.msra.mxu0 %v4563_v30  ;;  %4424 = vmatpush3.bf16.msra.mxu1 %v4564_v31 }
 0x22d   :  { %4403 = vmatprep.subr.bf16.mxu0 %v4565_v15  ;;  %4425 = vmatprep.subr.bf16.mxu1 %v4566_v32 }
 0x230   :  { %4404 = vmatpush3.bf16.msra.mxu0 %v4567_v33  ;;  %4426 = vmatpush3.bf16.msra.mxu1 %v4568_v35 }
 0x231   :  { %4405 = vmatprep.subr.bf16.mxu0 %v4569_v36  ;;  %4427 = vmatprep.subr.bf16.mxu1 %v4570_v37 }
 0x234   :  { %4406 = vmatpush3.bf16.msra.mxu0 %v4571_v38  ;;  %4428 = vmatpush3.bf16.msra.mxu1 %v4572_v39 }
 0x2ca   :  { %v2995_v48 = vpop.f32.mrb[4].mxu0  ;;  %v3159_v50 = vpop.f32.mrb[4].mxu1 }
 0x2cb   :  { %v4439_v49 = vadd.f32 %v2995_v48, %v501_v44  ;;  %v2997_v51 = vpop.f32.mrb[5].mxu0  ;;  %v4441_v52 = vadd.f32 %v3159_v50, %v509_v45  ;;  %v3161_v55 = vpop.f32.mrb[5].mxu1 }
 0x2cc   :  { %v4440_v54 = vadd.f32 %v2997_v51, %v505_v46  ;;  %v2999_v56 = vpop.f32.mrb[6].mxu0  ;;  %v4442_v59 = vadd.f32 %v3161_v55, %v513_v47  ;;  %v3163_v60 = vpop.f32.mrb[6].mxu1 }
 0x2cd   :  { %v3170_v58 = vmax.f32 %v4439_v49, 0.0  ;;  %v3000_v13 = vpop.f32.mrb[7].mxu0  ;;  %v3172_v61 = vmax.f32 %v4441_v52, 0.0  ;;  %v3164_v63 = vpop.f32.mrb[7].mxu1 }
 0x2ce   :  { %v3171_v62 = vmax.f32 %v4440_v54, 0.0  ;;  %v3173_v0 = vmax.f32 %v4442_v59, 0.0 }
 0x2cf   :  { %v3178_v2 = vpack.c.bf16 %v3170_v58, %v3170_v58  ;;  %v3180_v19 = vpack.c.bf16 %v3172_v61, %v3172_v61 }
 0x2d0   :  { %v3179_v1 = vpack.c.bf16 %v3171_v62, %v3171_v62  ;;  %v3181_v3 = vpack.c.bf16 %v3173_v0, %v3173_v0 }
 0x2d2   :  { %3813 = vmatprep.mubr.bf16.mxu0 %v3179_v1  ;;  %3853 = vmatprep.mubr.bf16.mxu1 %v3181_v3 }
 0x2d3   :  { %3814 = vmatmul.mubr.bf16.vlgmr.msra.gmra.mrb[12].mxu0 %v3178_v2  ;;  %3854 = vmatmul.mubr.bf16.vlgmr.msra.gmra.mrb[12].mxu1 %v3180_v19 }
 0x2ea   :  { %v4363_v4 = vpop.f32.mrb[8].mxu0  ;;  %v4385_v5 = vpop.f32.mrb[8].mxu1 }
 0x2eb   :  { %v4364_v7 = vpop.f32.mrb[9].mxu0  ;;  %v4386_v9 = vpop.f32.mrb[9].mxu1 }
 0x2ec   :  { %v4365_v8 = vadd.f32 %v4364_v7, %v4363_v4  ;;  %v4366_v10 = vpop.f32.mrb[10].mxu0  ;;  %v4387_v11 = vadd.f32 %v4386_v9, %v4385_v5  ;;  %v4388_v57 = vpop.f32.mrb[10].mxu1 }
 0x2ed   :  { %v4367_v14 = vpop.f32.mrb[11].mxu0  ;;  %v4389_v16 = vpop.f32.mrb[11].mxu1 }
 0x2ee   :  { %v3736_v12 = vadd.f32 %v4365_v8, %v4282_v6 }
 0x2f0   :  { %v3776_v34 = vadd.f32 %v4387_v11, %v3736_v12 }
 0x3a6   :  { %v4407_v17 = vpop.f32.mrb[12].mxu0  ;;  %v4429_v25 = vpop.f32.mrb[12].mxu1 }
 0x3a7   :  { %v4408_v18 = vpop.f32.mrb[13].mxu0  ;;  %v4430_v21 = vpop.f32.mrb[13].mxu1 }
 0x3a8   :  { %v4409_v20 = vadd.f32 %v4408_v18, %v4407_v17  ;;  %v4410_v53 = vpop.f32.mrb[14].mxu0  ;;  %v4431_v23 = vadd.f32 %v4430_v21, %v4429_v25  ;;  %v4432_v24 = vpop.f32.mrb[14].mxu1 }
 0x3a9   :  { %v4411_v26 = vpop.f32.mrb[15].mxu0  ;;  %v4433_v27 = vpop.f32.mrb[15].mxu1 }
 0x3aa   :  { %v3816_v22 = vadd.f32 %v4409_v20, %v3776_v34 }
 0x3ac   :  { %v3856_v28 = vadd.f32 %v4431_v23, %v3816_v22 }
 0x3ae   :  { %3861 = vst [vmem:[#allocation11] sm:$0xff] %v3856_v28 }
 0x3af   :  { %4695 = shalt.err (!%p4692_p2)
}
 0x3b0   :  { %s4696_s6 = scalar_lea.hbm %s4914_s5, 128 }
 0x3b1   :  { %p4697_p3 = scmp.ne.s32.totalorder %s4914_s5, %s4696_s6  ;;  %p4700_p4 = scmp.lt.u32.totalorder %s4696_s6, %s4914_s5 }
 0x3b3   :  { %p4702_p5 = pnand %p4700_p4, %p4697_p3 }
 0x3b5   :  { %4705 = shalt.err (!%p4702_p5)
}
 0x3b6   :  { %3871 = dma.vmem_to_hbm [thread:$0]  %s3869_s28, 128, %s4914_s5, [#allocation4]  }
 0x3b7   :  { %4712 = dma.done.wait [#allocation4], 128  }
 0x3b8   :  { %4713 = vsyncadd [#allocation4], 4294967168 }
 0x3b9   :  { %3875 = vsyncpa [#allocation3], 1 }
 0x3ba   :  { %3876 = vsyncpa [#allocation6], 1 }
 0x3bb   :  { %3877 = vsyncpa [#allocation9], 1 }
 0x3bc   :  { %3878 = vsyncpa [#allocation4], 1 }

</bundles_post_ra>
